<compile_context>
chip_gen: v5e
topology: v5e:2x2
jax: 0.10.0
libtpu: 0.0.40
codegen_flags: <defaults>
</compile_context>

<pallas_src>
import numpy as np
import jax
import jax.numpy as jnp
from jax.experimental import pallas as pl
from jax.experimental.pallas import tpu as pltpu

_PRIOR_SIGMA = 0.1
_N_OUT = 100       # real FC output features
_N_PAD = 128       # lane-dense padded output width


# ----------------------------- Pallas kernel ------------------------------- #

def _fused_kernel(patches_ref, w1_ref, cb_ref, fw_ref, fb_ref, out_ref):
    """All three siamese branches fused in one invocation (no grid).

    patches_ref: (3, B*Pp, F)   zero-padded im2col patches (Pp = P rounded up to 8)
    w1_ref:      (3, F, C)      conv weight in GEMM layout
    cb_ref:      (3, 1, C)      conv bias
    fw_ref:      (3, C, Pp, N)  FC weight; rows p >= P are exactly zero
    fb_ref:      (3, 1, N)      FC bias (padded to N=128 lanes)
    out_ref:     (3, B, N)
    """
    nb, bpp, _ = patches_ref.shape
    C = w1_ref.shape[-1]
    Pp = fw_ref.shape[2]
    B = bpp // Pp

    for i in range(nb):                       # static unroll over the 3 branches
        # Conv as a single batched GEMM over all samples of this branch.
        conv = jnp.dot(patches_ref[i], w1_ref[i],
                       preferred_element_type=jnp.float32)            # (B*Pp, C)
        conv = jnp.maximum(conv + cb_ref[i], 0.0)

        # FC: out[b, n] = fb[n] + sum_{p,c} conv[b*Pp + p, c] * fw[c, p, n]
        # as C lane-dense broadcast-FMAs over (Pp, N) + one sublane reduce per sample.
        accs = [None] * B
        for c in range(C):
            fwc = fw_ref[i, c]                                         # (Pp, N)
            for b in range(B):
                term = conv[b * Pp:(b + 1) * Pp, c:c + 1] * fwc        # (Pp, N)
                accs[b] = term if accs[b] is None else accs[b] + term
        rows = [jnp.sum(a, axis=0, keepdims=True) for a in accs]       # B x (1, N)
        out_ref[i] = jnp.concatenate(rows, axis=0) + fb_ref[i]         # (B, N)


def _fused_forward(patches, w1, cb, fw, fb):
    """patches (3,B*Pp,F), w1 (3,F,C), cb (3,1,C), fw (3,C,Pp,N), fb (3,1,N) -> (3,B,N)."""
    nb = patches.shape[0]
    N = fw.shape[-1]
    B = patches.shape[1] // fw.shape[2]
    vmem = pl.BlockSpec(memory_space=pltpu.MemorySpace.VMEM)   # whole array, one DMA
    return pl.pallas_call(
        _fused_kernel,
        out_shape=jax.ShapeDtypeStruct((nb, B, N), jnp.float32),
        in_specs=[vmem] * 5,
        out_specs=vmem,
    )(patches, w1, cb, fw, fb)


# ------------------------------- wrapper ------------------------------------ #

class BayesShotSiamesePallas:
    """Pallas implementation of bayes_shotSiameseNetwork's forward pass."""

    def __init__(self, kernel, strd, conv_chnls, shp_aftr_conv, *, key):
        self.kernel = int(kernel)
        self.strd = int(strd)
        self.conv_chnls = int(conv_chnls)
        self.shp_aftr_conv = int(shp_aftr_conv)
        C = self.conv_chnls
        F = self.kernel * self.kernel
        P = self.shp_aftr_conv // C
        assert P * C == self.shp_aftr_conv, (P, C, shp_aftr_conv)
        self.P = P
        self.Pp = -(-P // 8) * 8          # sublane-aligned patch count

        prior_ls = float(np.log(_PRIOR_SIGMA))
        k1, k2, k3, k4 = jax.random.split(key, 4)

        # Parameters are stored directly in the layouts the kernel consumes, so per-forward
        # sampling (mu + exp(log_sigma) * eps) emits kernel-ready weights with no transposes:
        #   conv weight (F, C)             [row f = fi*kw + fj]  <-> torch (C, 1, kh, kw)
        #   conv bias   (1, C)
        #   fc weight   (C, Pp, 128)  fw[c, p, n] <-> torch fc[n, c*P + p]; rows p >= P have
        #               mu = 0 and log_sigma = -1e9 so they sample to exactly 0.
        #   fc bias     (1, 128)       (cols >= 100 are padding, sliced off after the kernel)
        self.cw_mu = 0.1 * jax.random.normal(k1, (F, C), jnp.float32)
        self.cw_ls = jnp.full((F, C), prior_ls, jnp.float32)
        self.cb_mu = 0.1 * jax.random.normal(k2, (1, C), jnp.float32)
        self.cb_ls = jnp.full((1, C), prior_ls, jnp.float32)

        pad = self.Pp - P
        fw_mu = 0.1 * jax.random.normal(k3, (C, P, _N_PAD), jnp.float32)
        self.fw_mu = jnp.pad(fw_mu, ((0, 0), (0, pad), (0, 0)))
        self.fw_ls = jnp.pad(jnp.full((C, P, _N_PAD), prior_ls, jnp.float32),
                             ((0, 0), (0, pad), (0, 0)), constant_values=-1e9)
        self.fb_mu = 0.1 * jax.random.normal(k4, (1, _N_PAD), jnp.float32)
        self.fb_ls = jnp.full((1, _N_PAD), prior_ls, jnp.float32)

        self._forward = jax.jit(self._forward_impl)

    # torchbnn Bayes layers: weight = mu + exp(log_sigma) * eps, drawn fresh per forward;
    # each siamese branch sees independently sampled weights (stacked on a leading axis).
    def _sample_all(self, key):
        kcw, kcb, kfw, kfb = jax.random.split(key, 4)

        def samp(mu, ls, k):
            eps = jax.random.normal(k, (3,) + mu.shape, mu.dtype)
            return mu[None] + jnp.exp(ls)[None] * eps

        return (samp(self.cw_mu, self.cw_ls, kcw),
                samp(self.cb_mu, self.cb_ls, kcb),
                samp(self.fw_mu, self.fw_ls, kfw),
                samp(self.fb_mu, self.fb_ls, kfb))

    def _im2col_matrix(self, H, W):
        """Static 0/1 matrix (H*W, Pp*F): x_flat @ col == im2col patches (zero-padded in p)."""
        kh = kw = self.kernel
        s = self.strd
        oh = (H - kh) // s + 1
        ow = (W - kw) // s + 1
        P, F = oh * ow, kh * kw
        col = np.zeros((H * W, self.Pp * F), np.float32)
        for p in range(P):
            r0, c0 = (p // ow) * s, (p % ow) * s
            for f in range(F):
                col[(r0 + f // kw) * W + (c0 + f % kw), p * F + f] = 1.0
        return col, P

    def _forward_impl(self, x1, x2, x3, key):
        x_all = jnp.stack([x1, x2, x3], axis=0)                  # (3, B, 1, H, W)
        nb, B = x_all.shape[0], x_all.shape[1]
        H, W = x_all.shape[-2], x_all.shape[-1]
        F, Pp = self.kernel * self.kernel, self.Pp
        col, P = self._im2col_matrix(H, W)
        assert P == self.P and self.conv_chnls * P == self.shp_aftr_conv

        cw, cb, fw, fb = self._sample_all(key)                   # kernel-ready layouts

        # im2col for all branches & samples as one exact one-hot matmul (static matrix).
        x_flat = x_all.reshape(nb * B, H * W)
        patches = jnp.dot(x_flat, jnp.asarray(col),
                          precision=jax.lax.Precision.HIGHEST)   # (3B, Pp*F)
        patches = patches.reshape(nb, B * Pp, F)

        out = _fused_forward(patches, cw, cb, fw, fb)            # (3, B, 128)
        out = out[:, :, :_N_OUT]
        return out[0], out[1], out[2]

    def __call__(self, input1, input2, input3, key):
        return self._forward(input1, input2, input3, key)


# ------------------------------ reference ----------------------------------- #

def _to_torch_layouts(cw_k, cb_k, fw_k, fb_k, kernel, P):
    """Map one branch's kernel-layout sampled weights to PyTorch layouts."""
    C = cw_k.shape[-1]
    cw_t = jnp.transpose(cw_k, (1, 0)).reshape(C, 1, kernel, kernel)
    fw_t = jnp.transpose(fw_k[:, :P, :_N_OUT], (2, 0, 1)).reshape(_N_OUT, C * P)
    return cw_t, cb_k.reshape(-1), fw_t, fb_k.reshape(-1)[:_N_OUT]


def _ref_forward_once(x, cw_t, cb, fw_t, fb, strd):
    y = jax.lax.conv_general_dilated(
        x, cw_t, (strd, strd), "VALID",
        dimension_numbers=("NCHW", "OIHW", "NCHW"),
        precision=jax.lax.Precision.HIGHEST)
    y = jnp.maximum(y + cb[None, :, None, None], 0.0)
    y = y.reshape(y.shape[0], -1)                  # PyTorch CHW flatten
    return jnp.dot(y, fw_t.T, precision=jax.lax.Precision.HIGHEST) + fb[None, :]


# --------------------------------- main -------------------------------------- #

if __name__ == "__main__":
    key = jax.random.PRNGKey(0)
    kparam, kdata, kfwd = jax.random.split(key, 3)

    B, H, W = 2, 16, 16
    kernel, strd, conv_chnls = 5, 2, 4
    oh = (H - kernel) // strd + 1                  # 6
    shp_aftr_conv = conv_chnls * oh * oh           # 144

    model = BayesShotSiamesePallas(kernel, strd, conv_chnls, shp_aftr_conv, key=kparam)

    kd1, kd2, kd3 = jax.random.split(kdata, 3)
    x1 = jax.random.normal(kd1, (B, 1, H, W), jnp.float32)
    x2 = jax.random.normal(kd2, (B, 1, H, W), jnp.float32)
    x3 = jax.random.normal(kd3, (B, 1, H, W), jnp.float32)

    out1, out2, out3 = model(x1, x2, x3, kfwd)
    jax.block_until_ready((out1, out2, out3))
    assert out1.shape == (B, _N_OUT) and out2.shape == (B, _N_OUT) and out3.shape == (B, _N_OUT)

    # pure-JAX reference with the same sampled weights (sampling is deterministic in the key)
    cw_s, cb_s, fw_s, fb_s = model._sample_all(kfwd)
    for i, (x, o) in enumerate(zip((x1, x2, x3), (out1, out2, out3))):
        cw_t, cb_t, fw_t, fb_t = _to_torch_layouts(cw_s[i], cb_s[i], fw_s[i], fb_s[i],
                                                   kernel, model.P)
        ref = _ref_forward_once(x, cw_t, cb_t, fw_t, fb_t, strd)
        np.testing.assert_allclose(np.asarray(o), np.asarray(ref), rtol=1e-4, atol=1e-4)

    print("KERNEL_OK")
</pallas_src>

<mosaic_0001>
module attributes {stable_mosaic.version = 11 : i64} {
  func.func @_fused_kernel(%arg0: memref<3x80x25xf32, #tpu.memory_space<vmem>>, %arg1: memref<3x25x4xf32, #tpu.memory_space<vmem>>, %arg2: memref<3x1x4xf32, #tpu.memory_space<vmem>>, %arg3: memref<3x4x40x128xf32, #tpu.memory_space<vmem>>, %arg4: memref<3x1x128xf32, #tpu.memory_space<vmem>>, %arg5: memref<3x2x128xf32, #tpu.memory_space<vmem>>) attributes {dimension_semantics = [], scalar_prefetch = 0 : i64, scratch_operands = 0 : i64, tpu.core_type = #tpu.core_type<tc>} {
    %c0 = arith.constant 0 : index
    %c0_0 = arith.constant 0 : index
    %c0_1 = arith.constant 0 : index
    %0 = vector.load %arg0[%c0, %c0_0, %c0_1] : memref<3x80x25xf32, #tpu.memory_space<vmem>>, vector<1x80x25xf32>
    %1 = vector.shape_cast %0 : vector<1x80x25xf32> to vector<80x25xf32>
    %c0_2 = arith.constant 0 : index
    %c0_3 = arith.constant 0 : index
    %c0_4 = arith.constant 0 : index
    %2 = vector.load %arg1[%c0_2, %c0_3, %c0_4] : memref<3x25x4xf32, #tpu.memory_space<vmem>>, vector<1x25x4xf32>
    %3 = vector.shape_cast %2 : vector<1x25x4xf32> to vector<25x4xf32>
    %cst = arith.constant dense<0.000000e+00> : vector<80x4xf32>
    %4 = tpu.matmul %1, %3, %cst {dimension_numbers = #tpu.dot_dimension_numbers<[1], [0], [0], [1], [0, 0, 1, 1], [], []>} : vector<80x25xf32>, vector<25x4xf32>, vector<80x4xf32> -> vector<80x4xf32>
    %c0_5 = arith.constant 0 : index
    %c0_6 = arith.constant 0 : index
    %c0_7 = arith.constant 0 : index
    %5 = vector.load %arg2[%c0_5, %c0_6, %c0_7] : memref<3x1x4xf32, #tpu.memory_space<vmem>>, vector<1x1x4xf32>
    %6 = vector.shape_cast %5 : vector<1x1x4xf32> to vector<1x4xf32>
    %7 = vector.broadcast %6 : vector<1x4xf32> to vector<80x4xf32>
    %8 = arith.addf %4, %7 : vector<80x4xf32>
    %cst_8 = arith.constant 0.000000e+00 : f32
    %9 = vector.broadcast %cst_8 : f32 to vector<80x4xf32>
    %10 = arith.maximumf %8, %9 : vector<80x4xf32>
    %c0_9 = arith.constant 0 : index
    %c0_10 = arith.constant 0 : index
    %c0_11 = arith.constant 0 : index
    %c0_12 = arith.constant 0 : index
    %11 = vector.load %arg3[%c0_9, %c0_10, %c0_11, %c0_12] : memref<3x4x40x128xf32, #tpu.memory_space<vmem>>, vector<1x1x40x128xf32>
    %12 = vector.shape_cast %11 : vector<1x1x40x128xf32> to vector<40x128xf32>
    %13 = vector.extract_strided_slice %10 {offsets = [0, 0], sizes = [40, 1], strides = [1, 1]} : vector<80x4xf32> to vector<40x1xf32>
    %14 = vector.broadcast %13 : vector<40x1xf32> to vector<40x128xf32>
    %15 = arith.mulf %14, %12 : vector<40x128xf32>
    %16 = vector.extract_strided_slice %10 {offsets = [40, 0], sizes = [40, 1], strides = [1, 1]} : vector<80x4xf32> to vector<40x1xf32>
    %17 = vector.broadcast %16 : vector<40x1xf32> to vector<40x128xf32>
    %18 = arith.mulf %17, %12 : vector<40x128xf32>
    %c0_13 = arith.constant 0 : index
    %c1 = arith.constant 1 : index
    %c0_14 = arith.constant 0 : index
    %c0_15 = arith.constant 0 : index
    %19 = vector.load %arg3[%c0_13, %c1, %c0_14, %c0_15] : memref<3x4x40x128xf32, #tpu.memory_space<vmem>>, vector<1x1x40x128xf32>
    %20 = vector.shape_cast %19 : vector<1x1x40x128xf32> to vector<40x128xf32>
    %21 = vector.extract_strided_slice %10 {offsets = [0, 1], sizes = [40, 1], strides = [1, 1]} : vector<80x4xf32> to vector<40x1xf32>
    %22 = vector.broadcast %21 : vector<40x1xf32> to vector<40x128xf32>
    %23 = arith.mulf %22, %20 : vector<40x128xf32>
    %24 = arith.addf %15, %23 : vector<40x128xf32>
    %25 = vector.extract_strided_slice %10 {offsets = [40, 1], sizes = [40, 1], strides = [1, 1]} : vector<80x4xf32> to vector<40x1xf32>
    %26 = vector.broadcast %25 : vector<40x1xf32> to vector<40x128xf32>
    %27 = arith.mulf %26, %20 : vector<40x128xf32>
    %28 = arith.addf %18, %27 : vector<40x128xf32>
    %c0_16 = arith.constant 0 : index
    %c2 = arith.constant 2 : index
    %c0_17 = arith.constant 0 : index
    %c0_18 = arith.constant 0 : index
    %29 = vector.load %arg3[%c0_16, %c2, %c0_17, %c0_18] : memref<3x4x40x128xf32, #tpu.memory_space<vmem>>, vector<1x1x40x128xf32>
    %30 = vector.shape_cast %29 : vector<1x1x40x128xf32> to vector<40x128xf32>
    %31 = vector.extract_strided_slice %10 {offsets = [0, 2], sizes = [40, 1], strides = [1, 1]} : vector<80x4xf32> to vector<40x1xf32>
    %32 = vector.broadcast %31 : vector<40x1xf32> to vector<40x128xf32>
    %33 = arith.mulf %32, %30 : vector<40x128xf32>
    %34 = arith.addf %24, %33 : vector<40x128xf32>
    %35 = vector.extract_strided_slice %10 {offsets = [40, 2], sizes = [40, 1], strides = [1, 1]} : vector<80x4xf32> to vector<40x1xf32>
    %36 = vector.broadcast %35 : vector<40x1xf32> to vector<40x128xf32>
    %37 = arith.mulf %36, %30 : vector<40x128xf32>
    %38 = arith.addf %28, %37 : vector<40x128xf32>
    %c0_19 = arith.constant 0 : index
    %c3 = arith.constant 3 : index
    %c0_20 = arith.constant 0 : index
    %c0_21 = arith.constant 0 : index
    %39 = vector.load %arg3[%c0_19, %c3, %c0_20, %c0_21] : memref<3x4x40x128xf32, #tpu.memory_space<vmem>>, vector<1x1x40x128xf32>
    %40 = vector.shape_cast %39 : vector<1x1x40x128xf32> to vector<40x128xf32>
    %41 = vector.extract_strided_slice %10 {offsets = [0, 3], sizes = [40, 1], strides = [1, 1]} : vector<80x4xf32> to vector<40x1xf32>
    %42 = vector.broadcast %41 : vector<40x1xf32> to vector<40x128xf32>
    %43 = arith.mulf %42, %40 : vector<40x128xf32>
    %44 = arith.addf %34, %43 : vector<40x128xf32>
    %45 = vector.extract_strided_slice %10 {offsets = [40, 3], sizes = [40, 1], strides = [1, 1]} : vector<80x4xf32> to vector<40x1xf32>
    %46 = vector.broadcast %45 : vector<40x1xf32> to vector<40x128xf32>
    %47 = arith.mulf %46, %40 : vector<40x128xf32>
    %48 = arith.addf %38, %47 : vector<40x128xf32>
    %cst_22 = arith.constant dense<0.000000e+00> : vector<128xf32>
    %49 = vector.multi_reduction <add>, %44, %cst_22 [0] : vector<40x128xf32> to vector<128xf32>
    %50 = vector.shape_cast %49 : vector<128xf32> to vector<1x128xf32>
    %cst_23 = arith.constant dense<0.000000e+00> : vector<128xf32>
    %51 = vector.multi_reduction <add>, %48, %cst_23 [0] : vector<40x128xf32> to vector<128xf32>
    %52 = vector.shape_cast %51 : vector<128xf32> to vector<1x128xf32>
    %53 = tpu.concatenate %50, %52 in 0 : vector<1x128xf32>, vector<1x128xf32> -> vector<2x128xf32>
    %c0_24 = arith.constant 0 : index
    %c0_25 = arith.constant 0 : index
    %c0_26 = arith.constant 0 : index
    %54 = vector.load %arg4[%c0_24, %c0_25, %c0_26] : memref<3x1x128xf32, #tpu.memory_space<vmem>>, vector<1x1x128xf32>
    %55 = vector.shape_cast %54 : vector<1x1x128xf32> to vector<1x128xf32>
    %56 = vector.broadcast %55 : vector<1x128xf32> to vector<2x128xf32>
    %57 = arith.addf %53, %56 : vector<2x128xf32>
    %c0_27 = arith.constant 0 : index
    %c0_28 = arith.constant 0 : index
    %c0_29 = arith.constant 0 : index
    %58 = vector.load %arg5[%c0_27, %c0_28, %c0_29] : memref<3x2x128xf32, #tpu.memory_space<vmem>>, vector<1x2x128xf32>
    %59 = vector.shape_cast %58 : vector<1x2x128xf32> to vector<2x128xf32>
    %60 = vector.shape_cast %57 : vector<2x128xf32> to vector<1x2x128xf32>
    tpu.vector_store %arg5[%c0_27, %c0_28, %c0_29], %60 {strides = array<i32>} : memref<3x2x128xf32, #tpu.memory_space<vmem>>, vector<1x2x128xf32>,
    %c1_30 = arith.constant 1 : index
    %c0_31 = arith.constant 0 : index
    %c0_32 = arith.constant 0 : index
    %61 = vector.load %arg0[%c1_30, %c0_31, %c0_32] : memref<3x80x25xf32, #tpu.memory_space<vmem>>, vector<1x80x25xf32>
    %62 = vector.shape_cast %61 : vector<1x80x25xf32> to vector<80x25xf32>
    %c1_33 = arith.constant 1 : index
    %c0_34 = arith.constant 0 : index
    %c0_35 = arith.constant 0 : index
    %63 = vector.load %arg1[%c1_33, %c0_34, %c0_35] : memref<3x25x4xf32, #tpu.memory_space<vmem>>, vector<1x25x4xf32>
    %64 = vector.shape_cast %63 : vector<1x25x4xf32> to vector<25x4xf32>
    %cst_36 = arith.constant dense<0.000000e+00> : vector<80x4xf32>
    %65 = tpu.matmul %62, %64, %cst_36 {dimension_numbers = #tpu.dot_dimension_numbers<[1], [0], [0], [1], [0, 0, 1, 1], [], []>} : vector<80x25xf32>, vector<25x4xf32>, vector<80x4xf32> -> vector<80x4xf32>
    %c1_37 = arith.constant 1 : index
    %c0_38 = arith.constant 0 : index
    %c0_39 = arith.constant 0 : index
    %66 = vector.load %arg2[%c1_37, %c0_38, %c0_39] : memref<3x1x4xf32, #tpu.memory_space<vmem>>, vector<1x1x4xf32>
    %67 = vector.shape_cast %66 : vector<1x1x4xf32> to vector<1x4xf32>
    %68 = vector.broadcast %67 : vector<1x4xf32> to vector<80x4xf32>
    %69 = arith.addf %65, %68 : vector<80x4xf32>
    %cst_40 = arith.constant 0.000000e+00 : f32
    %70 = vector.broadcast %cst_40 : f32 to vector<80x4xf32>
    %71 = arith.maximumf %69, %70 : vector<80x4xf32>
    %c1_41 = arith.constant 1 : index
    %c0_42 = arith.constant 0 : index
    %c0_43 = arith.constant 0 : index
    %c0_44 = arith.constant 0 : index
    %72 = vector.load %arg3[%c1_41, %c0_42, %c0_43, %c0_44] : memref<3x4x40x128xf32, #tpu.memory_space<vmem>>, vector<1x1x40x128xf32>
    %73 = vector.shape_cast %72 : vector<1x1x40x128xf32> to vector<40x128xf32>
    %74 = vector.extract_strided_slice %71 {offsets = [0, 0], sizes = [40, 1], strides = [1, 1]} : vector<80x4xf32> to vector<40x1xf32>
    %75 = vector.broadcast %74 : vector<40x1xf32> to vector<40x128xf32>
    %76 = arith.mulf %75, %73 : vector<40x128xf32>
    %77 = vector.extract_strided_slice %71 {offsets = [40, 0], sizes = [40, 1], strides = [1, 1]} : vector<80x4xf32> to vector<40x1xf32>
    %78 = vector.broadcast %77 : vector<40x1xf32> to vector<40x128xf32>
    %79 = arith.mulf %78, %73 : vector<40x128xf32>
    %c1_45 = arith.constant 1 : index
    %c1_46 = arith.constant 1 : index
    %c0_47 = arith.constant 0 : index
    %c0_48 = arith.constant 0 : index
    %80 = vector.load %arg3[%c1_45, %c1_46, %c0_47, %c0_48] : memref<3x4x40x128xf32, #tpu.memory_space<vmem>>, vector<1x1x40x128xf32>
    %81 = vector.shape_cast %80 : vector<1x1x40x128xf32> to vector<40x128xf32>
    %82 = vector.extract_strided_slice %71 {offsets = [0, 1], sizes = [40, 1], strides = [1, 1]} : vector<80x4xf32> to vector<40x1xf32>
    %83 = vector.broadcast %82 : vector<40x1xf32> to vector<40x128xf32>
    %84 = arith.mulf %83, %81 : vector<40x128xf32>
    %85 = arith.addf %76, %84 : vector<40x128xf32>
    %86 = vector.extract_strided_slice %71 {offsets = [40, 1], sizes = [40, 1], strides = [1, 1]} : vector<80x4xf32> to vector<40x1xf32>
    %87 = vector.broadcast %86 : vector<40x1xf32> to vector<40x128xf32>
    %88 = arith.mulf %87, %81 : vector<40x128xf32>
    %89 = arith.addf %79, %88 : vector<40x128xf32>
    %c1_49 = arith.constant 1 : index
    %c2_50 = arith.constant 2 : index
    %c0_51 = arith.constant 0 : index
    %c0_52 = arith.constant 0 : index
    %90 = vector.load %arg3[%c1_49, %c2_50, %c0_51, %c0_52] : memref<3x4x40x128xf32, #tpu.memory_space<vmem>>, vector<1x1x40x128xf32>
    %91 = vector.shape_cast %90 : vector<1x1x40x128xf32> to vector<40x128xf32>
    %92 = vector.extract_strided_slice %71 {offsets = [0, 2], sizes = [40, 1], strides = [1, 1]} : vector<80x4xf32> to vector<40x1xf32>
    %93 = vector.broadcast %92 : vector<40x1xf32> to vector<40x128xf32>
    %94 = arith.mulf %93, %91 : vector<40x128xf32>
    %95 = arith.addf %85, %94 : vector<40x128xf32>
    %96 = vector.extract_strided_slice %71 {offsets = [40, 2], sizes = [40, 1], strides = [1, 1]} : vector<80x4xf32> to vector<40x1xf32>
    %97 = vector.broadcast %96 : vector<40x1xf32> to vector<40x128xf32>
    %98 = arith.mulf %97, %91 : vector<40x128xf32>
    %99 = arith.addf %89, %98 : vector<40x128xf32>
    %c1_53 = arith.constant 1 : index
    %c3_54 = arith.constant 3 : index
    %c0_55 = arith.constant 0 : index
    %c0_56 = arith.constant 0 : index
    %100 = vector.load %arg3[%c1_53, %c3_54, %c0_55, %c0_56] : memref<3x4x40x128xf32, #tpu.memory_space<vmem>>, vector<1x1x40x128xf32>
    %101 = vector.shape_cast %100 : vector<1x1x40x128xf32> to vector<40x128xf32>
    %102 = vector.extract_strided_slice %71 {offsets = [0, 3], sizes = [40, 1], strides = [1, 1]} : vector<80x4xf32> to vector<40x1xf32>
    %103 = vector.broadcast %102 : vector<40x1xf32> to vector<40x128xf32>
    %104 = arith.mulf %103, %101 : vector<40x128xf32>
    %105 = arith.addf %95, %104 : vector<40x128xf32>
    %106 = vector.extract_strided_slice %71 {offsets = [40, 3], sizes = [40, 1], strides = [1, 1]} : vector<80x4xf32> to vector<40x1xf32>
    %107 = vector.broadcast %106 : vector<40x1xf32> to vector<40x128xf32>
    %108 = arith.mulf %107, %101 : vector<40x128xf32>
    %109 = arith.addf %99, %108 : vector<40x128xf32>
    %cst_57 = arith.constant dense<0.000000e+00> : vector<128xf32>
    %110 = vector.multi_reduction <add>, %105, %cst_57 [0] : vector<40x128xf32> to vector<128xf32>
    %111 = vector.shape_cast %110 : vector<128xf32> to vector<1x128xf32>
    %cst_58 = arith.constant dense<0.000000e+00> : vector<128xf32>
    %112 = vector.multi_reduction <add>, %109, %cst_58 [0] : vector<40x128xf32> to vector<128xf32>
    %113 = vector.shape_cast %112 : vector<128xf32> to vector<1x128xf32>
    %114 = tpu.concatenate %111, %113 in 0 : vector<1x128xf32>, vector<1x128xf32> -> vector<2x128xf32>
    %c1_59 = arith.constant 1 : index
    %c0_60 = arith.constant 0 : index
    %c0_61 = arith.constant 0 : index
    %115 = vector.load %arg4[%c1_59, %c0_60, %c0_61] : memref<3x1x128xf32, #tpu.memory_space<vmem>>, vector<1x1x128xf32>
    %116 = vector.shape_cast %115 : vector<1x1x128xf32> to vector<1x128xf32>
    %117 = vector.broadcast %116 : vector<1x128xf32> to vector<2x128xf32>
    %118 = arith.addf %114, %117 : vector<2x128xf32>
    %c1_62 = arith.constant 1 : index
    %c0_63 = arith.constant 0 : index
    %c0_64 = arith.constant 0 : index
    %119 = vector.load %arg5[%c1_62, %c0_63, %c0_64] : memref<3x2x128xf32, #tpu.memory_space<vmem>>, vector<1x2x128xf32>
    %120 = vector.shape_cast %119 : vector<1x2x128xf32> to vector<2x128xf32>
    %121 = vector.shape_cast %118 : vector<2x128xf32> to vector<1x2x128xf32>
    tpu.vector_store %arg5[%c1_62, %c0_63, %c0_64], %121 {strides = array<i32>} : memref<3x2x128xf32, #tpu.memory_space<vmem>>, vector<1x2x128xf32>,
    %c2_65 = arith.constant 2 : index
    %c0_66 = arith.constant 0 : index
    %c0_67 = arith.constant 0 : index
    %122 = vector.load %arg0[%c2_65, %c0_66, %c0_67] : memref<3x80x25xf32, #tpu.memory_space<vmem>>, vector<1x80x25xf32>
    %123 = vector.shape_cast %122 : vector<1x80x25xf32> to vector<80x25xf32>
    %c2_68 = arith.constant 2 : index
    %c0_69 = arith.constant 0 : index
    %c0_70 = arith.constant 0 : index
    %124 = vector.load %arg1[%c2_68, %c0_69, %c0_70] : memref<3x25x4xf32, #tpu.memory_space<vmem>>, vector<1x25x4xf32>
    %125 = vector.shape_cast %124 : vector<1x25x4xf32> to vector<25x4xf32>
    %cst_71 = arith.constant dense<0.000000e+00> : vector<80x4xf32>
    %126 = tpu.matmul %123, %125, %cst_71 {dimension_numbers = #tpu.dot_dimension_numbers<[1], [0], [0], [1], [0, 0, 1, 1], [], []>} : vector<80x25xf32>, vector<25x4xf32>, vector<80x4xf32> -> vector<80x4xf32>
    %c2_72 = arith.constant 2 : index
    %c0_73 = arith.constant 0 : index
    %c0_74 = arith.constant 0 : index
    %127 = vector.load %arg2[%c2_72, %c0_73, %c0_74] : memref<3x1x4xf32, #tpu.memory_space<vmem>>, vector<1x1x4xf32>
    %128 = vector.shape_cast %127 : vector<1x1x4xf32> to vector<1x4xf32>
    %129 = vector.broadcast %128 : vector<1x4xf32> to vector<80x4xf32>
    %130 = arith.addf %126, %129 : vector<80x4xf32>
    %cst_75 = arith.constant 0.000000e+00 : f32
    %131 = vector.broadcast %cst_75 : f32 to vector<80x4xf32>
    %132 = arith.maximumf %130, %131 : vector<80x4xf32>
    %c2_76 = arith.constant 2 : index
    %c0_77 = arith.constant 0 : index
    %c0_78 = arith.constant 0 : index
    %c0_79 = arith.constant 0 : index
    %133 = vector.load %arg3[%c2_76, %c0_77, %c0_78, %c0_79] : memref<3x4x40x128xf32, #tpu.memory_space<vmem>>, vector<1x1x40x128xf32>
    %134 = vector.shape_cast %133 : vector<1x1x40x128xf32> to vector<40x128xf32>
    %135 = vector.extract_strided_slice %132 {offsets = [0, 0], sizes = [40, 1], strides = [1, 1]} : vector<80x4xf32> to vector<40x1xf32>
    %136 = vector.broadcast %135 : vector<40x1xf32> to vector<40x128xf32>
    %137 = arith.mulf %136, %134 : vector<40x128xf32>
    %138 = vector.extract_strided_slice %132 {offsets = [40, 0], sizes = [40, 1], strides = [1, 1]} : vector<80x4xf32> to vector<40x1xf32>
    %139 = vector.broadcast %138 : vector<40x1xf32> to vector<40x128xf32>
    %140 = arith.mulf %139, %134 : vector<40x128xf32>
    %c2_80 = arith.constant 2 : index
    %c1_81 = arith.constant 1 : index
    %c0_82 = arith.constant 0 : index
    %c0_83 = arith.constant 0 : index
    %141 = vector.load %arg3[%c2_80, %c1_81, %c0_82, %c0_83] : memref<3x4x40x128xf32, #tpu.memory_space<vmem>>, vector<1x1x40x128xf32>
    %142 = vector.shape_cast %141 : vector<1x1x40x128xf32> to vector<40x128xf32>
    %143 = vector.extract_strided_slice %132 {offsets = [0, 1], sizes = [40, 1], strides = [1, 1]} : vector<80x4xf32> to vector<40x1xf32>
    %144 = vector.broadcast %143 : vector<40x1xf32> to vector<40x128xf32>
    %145 = arith.mulf %144, %142 : vector<40x128xf32>
    %146 = arith.addf %137, %145 : vector<40x128xf32>
    %147 = vector.extract_strided_slice %132 {offsets = [40, 1], sizes = [40, 1], strides = [1, 1]} : vector<80x4xf32> to vector<40x1xf32>
    %148 = vector.broadcast %147 : vector<40x1xf32> to vector<40x128xf32>
    %149 = arith.mulf %148, %142 : vector<40x128xf32>
    %150 = arith.addf %140, %149 : vector<40x128xf32>
    %c2_84 = arith.constant 2 : index
    %c2_85 = arith.constant 2 : index
    %c0_86 = arith.constant 0 : index
    %c0_87 = arith.constant 0 : index
    %151 = vector.load %arg3[%c2_84, %c2_85, %c0_86, %c0_87] : memref<3x4x40x128xf32, #tpu.memory_space<vmem>>, vector<1x1x40x128xf32>
    %152 = vector.shape_cast %151 : vector<1x1x40x128xf32> to vector<40x128xf32>
    %153 = vector.extract_strided_slice %132 {offsets = [0, 2], sizes = [40, 1], strides = [1, 1]} : vector<80x4xf32> to vector<40x1xf32>
    %154 = vector.broadcast %153 : vector<40x1xf32> to vector<40x128xf32>
    %155 = arith.mulf %154, %152 : vector<40x128xf32>
    %156 = arith.addf %146, %155 : vector<40x128xf32>
    %157 = vector.extract_strided_slice %132 {offsets = [40, 2], sizes = [40, 1], strides = [1, 1]} : vector<80x4xf32> to vector<40x1xf32>
    %158 = vector.broadcast %157 : vector<40x1xf32> to vector<40x128xf32>
    %159 = arith.mulf %158, %152 : vector<40x128xf32>
    %160 = arith.addf %150, %159 : vector<40x128xf32>
    %c2_88 = arith.constant 2 : index
    %c3_89 = arith.constant 3 : index
    %c0_90 = arith.constant 0 : index
    %c0_91 = arith.constant 0 : index
    %161 = vector.load %arg3[%c2_88, %c3_89, %c0_90, %c0_91] : memref<3x4x40x128xf32, #tpu.memory_space<vmem>>, vector<1x1x40x128xf32>
    %162 = vector.shape_cast %161 : vector<1x1x40x128xf32> to vector<40x128xf32>
    %163 = vector.extract_strided_slice %132 {offsets = [0, 3], sizes = [40, 1], strides = [1, 1]} : vector<80x4xf32> to vector<40x1xf32>
    %164 = vector.broadcast %163 : vector<40x1xf32> to vector<40x128xf32>
    %165 = arith.mulf %164, %162 : vector<40x128xf32>
    %166 = arith.addf %156, %165 : vector<40x128xf32>
    %167 = vector.extract_strided_slice %132 {offsets = [40, 3], sizes = [40, 1], strides = [1, 1]} : vector<80x4xf32> to vector<40x1xf32>
    %168 = vector.broadcast %167 : vector<40x1xf32> to vector<40x128xf32>
    %169 = arith.mulf %168, %162 : vector<40x128xf32>
    %170 = arith.addf %160, %169 : vector<40x128xf32>
    %cst_92 = arith.constant dense<0.000000e+00> : vector<128xf32>
    %171 = vector.multi_reduction <add>, %166, %cst_92 [0] : vector<40x128xf32> to vector<128xf32>
    %172 = vector.shape_cast %171 : vector<128xf32> to vector<1x128xf32>
    %cst_93 = arith.constant dense<0.000000e+00> : vector<128xf32>
    %173 = vector.multi_reduction <add>, %170, %cst_93 [0] : vector<40x128xf32> to vector<128xf32>
    %174 = vector.shape_cast %173 : vector<128xf32> to vector<1x128xf32>
    %175 = tpu.concatenate %172, %174 in 0 : vector<1x128xf32>, vector<1x128xf32> -> vector<2x128xf32>
    %c2_94 = arith.constant 2 : index
    %c0_95 = arith.constant 0 : index
    %c0_96 = arith.constant 0 : index
    %176 = vector.load %arg4[%c2_94, %c0_95, %c0_96] : memref<3x1x128xf32, #tpu.memory_space<vmem>>, vector<1x1x128xf32>
    %177 = vector.shape_cast %176 : vector<1x1x128xf32> to vector<1x128xf32>
    %178 = vector.broadcast %177 : vector<1x128xf32> to vector<2x128xf32>
    %179 = arith.addf %175, %178 : vector<2x128xf32>
    %c2_97 = arith.constant 2 : index
    %c0_98 = arith.constant 0 : index
    %c0_99 = arith.constant 0 : index
    %180 = vector.load %arg5[%c2_97, %c0_98, %c0_99] : memref<3x2x128xf32, #tpu.memory_space<vmem>>, vector<1x2x128xf32>
    %181 = vector.shape_cast %180 : vector<1x2x128xf32> to vector<2x128xf32>
    %182 = vector.shape_cast %179 : vector<2x128xf32> to vector<1x2x128xf32>
    tpu.vector_store %arg5[%c2_97, %c0_98, %c0_99], %182 {strides = array<i32>} : memref<3x2x128xf32, #tpu.memory_space<vmem>>, vector<1x2x128xf32>,
    return
  }
}

</mosaic_0001>

<bundles_post_ra>
// kernel: _forward_impl.1
= control target key start
LH: loop header
LB: loop body
LE: loop exit
PB: predicated region body
PF: predicated region fallthrough
CT: control target
= control target key end

     0   :  { %vm69_vm0 = vcmask 1040384   ;;  %vm38_vm1 = vcmask 203776   ;;  %v2448_v39 = vmov 3   ;;  %v2454_v40 = vmov 1   ;;  %s2442_s1 = inlined_call_operand.vmem [shape: f32[3,25,4], index: 1, kind: input, shape index: {}]   ;;  %s2443_s0 = inlined_call_operand.vmem [shape: f32[3,80,25], index: 0, kind: input, shape index: {}]   ;;  %s2444_s2 = inlined_call_operand.vmem [shape: f32[3,1,4], index: 2, kind: input, shape index: {}]   ;;  %s2445_s3 = inlined_call_operand.vmem [shape: f32[3,4,40,128], index: 3, kind: input, shape index: {}]   ;;  %s2446_s4 = inlined_call_operand.vmem [shape: f32[3,1,128], index: 4, kind: input, shape index: {}]   ;;  %s2447_s5 = inlined_call_operand.vmem [shape: f32[3,2,128], index: 5, kind: output, shape index: {}]  }
   0x1   :  { %v33_v0 = vld [vmem:[%s2442_s1 + $0x18] sm:$0x1]  ;;  %v32_v2 = vld [vmem:[%s2442_s1 + $0x10] sm:$0xff]  ;;  %v31_v4 = vld [vmem:[%s2442_s1 + $0x8] sm:$0xff]  ;;  %1372 = vset.pattern.permute.xlu2 %v2448_v39  ;;  %1371 = vset.pattern.permute.xlu1 %v2454_v40  ;;  %v2452_v41 = vmov 0   ;;  %v2450_v57 = vmov 2  }
   0x2   :  { %v1271_v1 = vld [vmem:[%s2442_s1 + $0x38] sm:$0x1]  ;;  %1232 = vmatpush.msk.msra.mxu0 %vm69_vm0, %v33_v0  ;;  %v1270_v3 = vld [vmem:[%s2442_s1 + $0x30] sm:$0xff]  ;;  %v1269_v5 = vld [vmem:[%s2442_s1 + $0x28] sm:$0xff]  ;;  %1354 = vmatpush.msk.msra.mxu3 %vm69_vm0, %v33_v0 }
   0x3   :  { %1273 = vmatpush.msk.msra.mxu1 %vm69_vm0, %v1271_v1  ;;  %v30_v6 = vld [vmem:[%s2442_s1] sm:$0xff]  ;;  %v1258_v9 = vld [vmem:[%s2443_s0 + $0x50] sm:$0xff]  ;;  %v1319_v10 = vld [vmem:[%s2442_s1 + $0x58] sm:$0x1]  ;;  %1370 = vset.pattern.permute.xlu0 %v2452_v41 }
   0x4   :  { %86 = vmatpush.msra.mxu0 %v32_v2  ;;  %v1268_v7 = vld [vmem:[%s2442_s1 + $0x20] sm:$0xff]  ;;  %1355 = vmatpush.msra.mxu3 %v32_v2  ;;  %v1318_v11 = vld [vmem:[%s2442_s1 + $0x50] sm:$0xff]  ;;  %v1317_v13 = vld [vmem:[%s2442_s1 + $0x48] sm:$0xff] }
   0x5   :  { %487 = vmatpush.msra.mxu1 %v1270_v3  ;;  %v20_v8 = vld [vmem:[%s2443_s0] sm:$0xff]  ;;  %1321 = vmatpush.msk.msra.mxu2 %vm69_vm0, %v1319_v10  ;;  %v21_v16 = vld [vmem:[%s2443_s0 + $0x8] sm:$0xff]  ;;  %v1259_v17 = vld [vmem:[%s2443_s0 + $0x58] sm:$0xff] }
   0x6   :  { %87 = vmatpush.msra.mxu0 %v31_v4  ;;  %1356 = vmatpush.msra.mxu3 %v31_v4  ;;  %v28_v12 = vld [vmem:[%s2443_s0 + $0x40] sm:$0xff]  ;;  %v29_v18 = vld [vmem:[%s2443_s0 + $0x48] sm:$0xff]  ;;  %v22_v20 = vld [vmem:[%s2443_s0 + $0x10] sm:$0xff] }
   0x7   :  { %488 = vmatpush.msra.mxu1 %v1269_v5  ;;  %891 = vmatpush.msra.mxu2 %v1318_v11  ;;  %v1316_v14 = vld [vmem:[%s2442_s1 + $0x40] sm:$0xff]  ;;  %v1307_v19 = vld [vmem:[%s2443_s0 + $0xa8] sm:$0xff]  ;;  %v1308_v22 = vld [vmem:[%s2443_s0 + $0xb0] sm:$0xff] }
   0x8   :  { %88 = vmatpush.msra.mxu0 %v30_v6  ;;  %1357 = vmatpush.msra.mxu3 %v30_v6  ;;  %v1306_v15 = vld [vmem:[%s2443_s0 + $0xa0] sm:$0xff]  ;;  %v23_v23 = vld [vmem:[%s2443_s0 + $0x18] sm:$0xff]  ;;  %v1261_v24 = vld [vmem:[%s2443_s0 + $0x68] sm:$0xff] }
   0x9   :  { %489 = vmatpush.msra.mxu1 %v1268_v7  ;;  %1233 = vmatmul.msk.f32.vlgmr.msra.gmra.mxu0 %vm38_vm1, %v20_v8  ;;  %v1260_v21 = vld [vmem:[%s2443_s0 + $0x60] sm:$0xff]  ;;  %v1266_v25 = vld [vmem:[%s2443_s0 + $0x90] sm:$0xff]  ;;  %v1309_v26 = vld [vmem:[%s2443_s0 + $0xb8] sm:$0xff] }
   0xa   :  { %1274 = vmatmul.msk.f32.vlgmr.msra.gmra.mxu1 %vm38_vm1, %v1258_v9  ;;  %1241 = vmatmul.msk.f32.vlgmr.msra.gmra.mxu3 %vm38_vm1, %v28_v12  ;;  %v24_v27 = vld [vmem:[%s2443_s0 + $0x20] sm:$0xff]  ;;  %v1262_v28 = vld [vmem:[%s2443_s0 + $0x70] sm:$0xff]  ;;  %v1267_v29 = vld [vmem:[%s2443_s0 + $0x98] sm:$0xff] }
   0xb   :  { %892 = vmatpush.msra.mxu2 %v1317_v13  ;;  %1358 = vmatpush.msk.msrb.mxu3 %vm69_vm0, %v1271_v1  ;;  %v1310_v30 = vld [vmem:[%s2443_s0 + $0xc0] sm:$0xff]  ;;  %v25_v31 = vld [vmem:[%s2443_s0 + $0x28] sm:$0xff]  ;;  %v1263_v32 = vld [vmem:[%s2443_s0 + $0x78] sm:$0xff] }
   0xc   :  { %v1314_v33 = vld [vmem:[%s2443_s0 + $0xe0] sm:$0xff]  ;;  %v1311_v34 = vld [vmem:[%s2443_s0 + $0xc8] sm:$0xff]  ;;  %v26_v35 = vld [vmem:[%s2443_s0 + $0x30] sm:$0xff] }
   0xd   :  { %893 = vmatpush.msra.mxu2 %v1316_v14  ;;  %1359 = vmatpush.msrb.mxu3 %v1270_v3  ;;  %v1264_v36 = vld [vmem:[%s2443_s0 + $0x80] sm:$0xff]  ;;  %v1265_v37 = vld [vmem:[%s2443_s0 + $0x88] sm:$0xff]  ;;  %v27_v38 = vld [vmem:[%s2443_s0 + $0x38] sm:$0xff] }
   0xe   :  { %1322 = vmatmul.msk.f32.vlgmr.msra.gmra.mxu2 %vm38_vm1, %v1306_v15  ;;  %v1312_v42 = vld [vmem:[%s2443_s0 + $0xd0] sm:$0xff]  ;;  %v1315_v43 = vld [vmem:[%s2443_s0 + $0xe8] sm:$0xff]  ;;  %v1636_v44 = vld [vmem:[%s2444_s2] ss:$0 sm:$0xff] }
   0xf   :  { %1360 = vmatpush.msrb.mxu3 %v1269_v5  ;;  %v1642_v48 = vld [vmem:[%s2444_s2 + $0x1] ss:$0 sm:$0xff] }
  0x11   :  { %1234 = vmatmul.msk.f32.gmra.mxu0 %vm38_vm1, %v21_v16  ;;  %1361 = vmatpush.msrb.mxu3 %v1268_v7 }
  0x12   :  { %1275 = vmatmul.msk.f32.gmra.mxu1 %vm38_vm1, %v1259_v17  ;;  %1242 = vmatmul.msk.f32.gmra.mxu3 %vm38_vm1, %v29_v18 }
  0x13   :  { %1362 = vmatpush.msk.msra.mxu3 %vm69_vm0, %v1319_v10 }
  0x15   :  { %1363 = vmatpush.msra.mxu3 %v1318_v11 }
  0x16   :  { %1323 = vmatmul.msk.f32.gmra.mxu2 %vm38_vm1, %v1307_v19 }
  0x17   :  { %1364 = vmatpush.msra.mxu3 %v1317_v13 }
  0x19   :  { %1235 = vmatmul.msk.f32.gmra.mxu0 %vm38_vm1, %v22_v20  ;;  %1365 = vmatpush.msra.mxu3 %v1316_v14 }
  0x1a   :  { %1276 = vmatmul.msk.f32.gmra.mxu1 %vm38_vm1, %v1260_v21  ;;  %1282 = vmatmul.msk.f32.vlgmr.msrb.gmra.mxu3 %vm38_vm1, %v1266_v25 }
  0x1e   :  { %1324 = vmatmul.msk.f32.gmra.mxu2 %vm38_vm1, %v1308_v22 }
  0x21   :  { %1236 = vmatmul.msk.f32.gmra.mxu0 %vm38_vm1, %v23_v23 }
  0x22   :  { %1277 = vmatmul.msk.f32.gmra.mxu1 %vm38_vm1, %v1261_v24  ;;  %1283 = vmatmul.msk.f32.gmra.mxu3 %vm38_vm1, %v1267_v29 }
  0x26   :  { %1325 = vmatmul.msk.f32.gmra.mxu2 %vm38_vm1, %v1309_v26 }
  0x29   :  { %1237 = vmatmul.msk.f32.gmra.mxu0 %vm38_vm1, %v24_v27 }
  0x2a   :  { %1278 = vmatmul.msk.f32.gmra.mxu1 %vm38_vm1, %v1262_v28  ;;  %1330 = vmatmul.msk.f32.vlgmr.msra.gmra.mxu3 %vm38_vm1, %v1314_v33 }
  0x2e   :  { %1326 = vmatmul.msk.f32.gmra.mxu2 %vm38_vm1, %v1310_v30  ;;  %v1725_v30 = vld [vmem:[%s2444_s2 + $0x2] ss:$0 sm:$0xff] }
  0x31   :  { %1238 = vmatmul.msk.f32.gmra.mxu0 %vm38_vm1, %v25_v31 }
  0x32   :  { %1279 = vmatmul.msk.f32.gmra.mxu1 %vm38_vm1, %v1263_v32  ;;  %1331 = vmatmul.msk.f32.gmra.mxu3 %vm38_vm1, %v1315_v43 }
  0x36   :  { %1327 = vmatmul.msk.f32.gmra.mxu2 %vm38_vm1, %v1311_v34 }
  0x39   :  { %1239 = vmatmul.msk.f32.gmra.mxu0 %vm38_vm1, %v26_v35 }
  0x3a   :  { %1280 = vmatmul.msk.f32.gmra.mxu1 %vm38_vm1, %v1264_v36 }
  0x3e   :  { %1328 = vmatmul.msk.f32.gmra.mxu2 %vm38_vm1, %v1312_v42 }
  0x41   :  { %1240 = vmatmul.msk.f32.gmra.mxu0 %vm38_vm1, %v27_v38 }
  0x42   :  { %1281 = vmatmul.msk.f32.gmra.mxu1 %vm38_vm1, %v1265_v37 }
  0x86   :  { %v90_v45 = vpop.f32.mrf.mxu0 }
  0x87   :  { %v491_v46 = vpop.f32.mrf.mxu1  ;;  %v91_v47 = vadd.f32 %v1636_v44, %v90_v45 }
  0x88   :  { %v492_v50 = vadd.f32 %v1642_v48, %v491_v46 }
  0x89   :  { %v1644_v49 = vmax.f32 %v91_v47, 0.0 }
  0x8a   :  { %v1651_v55 = vmax.f32 %v492_v50, 0.0 }
  0x8b   :  { %334 = vperm.xlu2 %1372, %v1644_v49   ;;  %202 = vperm.xlu1 %1371, %v1644_v49  }
  0x8c   :  { %137 = vperm.xlu0 %1370, %v1644_v49  }
  0x8d   :  { %v114_v54 = vpop.f32.mrf.mxu3 }
  0x8e   :  { %v93_v51 = vpop.f32.mrf.mxu0  ;;  %v115_v58 = vadd.f32 %v1636_v44, %v114_v54 }
  0x8f   :  { %v494_v52 = vpop.f32.mrf.mxu1  ;;  %v94_v53 = vadd.f32 %v1636_v44, %v93_v51 }
  0x90   :  { %v1662_v0 = vmax.f32 %v115_v58, 0.0  ;;  %v495_v11 = vadd.f32 %v1642_v48, %v494_v52  ;;  %v1313_v58 = vld [vmem:[%s2443_s0 + $0xd8] sm:$0xff] }
  0x91   :  { %v1653_v56 = vmax.f32 %v94_v53, 0.0  ;;  %v895_v62 = vpop.f32.mrf.mxu2  ;;  %1329 = vmatmul.msk.f32.gmra.mxu2 %vm38_vm1, %v1313_v58  ;;  %v1859_v58 = vld [vmem:[%s2445_s3 + $0x58] sm:$0xff] }
  0x92   :  { %v1694_v14 = vmax.f32 %v495_v11, 0.0  ;;  %v896_v34 = vadd.f32 %v1725_v30, %v895_v62 }
  0x93   :  { %1374 = vset.pattern.permute.xlu2 %v2450_v57  ;;  %1373 = vset.pattern.permute.xlu1 %v2452_v41 }
  0x94   :  { %670 = vperm.xlu2 %1374, %v1651_v55   ;;  %539 = vperm.xlu1 %1373, %v1651_v55   ;;  %v1737_v35 = vmax.f32 %v896_v34, 0.0 }
  0x95   :  { %142 = vperm.xlu0 %1370, %v1653_v56   ;;  %v117_v61 = vpop.f32.mrf.mxu3 }
  0x96   :  { %v96_v59 = vpop.f32.mrf.mxu0  ;;  %v118_v63 = vadd.f32 %v1636_v44, %v117_v61 }
  0x97   :  { %v497_v60 = vpop.f32.mrf.mxu1  ;;  %v97_v25 = vadd.f32 %v1636_v44, %v96_v59 }
  0x98   :  { %v1664_v1 = vmax.f32 %v118_v63, 0.0  ;;  %v498_v4 = vadd.f32 %v1642_v48, %v497_v60 }
  0x99   :  { %v1678_v7 = vpop.f32.mrf.mxu2  ;;  %v122_v27 = vmax.f32 %v97_v25, 0.0 }
  0x9a   :  { %v1680_v8 = vmax.f32 %v498_v4, 0.0  ;;  %v1801_v4 = vld [vmem:[%s2445_s3] sm:$0xff] }
  0x9b   :  { %2466 = vst [vmem:[#allocation2_spill] sm:$0xff] %v1801_v4 }
  0x9c   :  { %1375 = vset.pattern.permute.xlu2 %v2452_v41  ;;  %1376 = vset.pattern.permute.xlu1 %v2454_v40 }
  0x9d   :  { %182 = vperm.xlu2 %1375, %v1662_v0   ;;  %244 = vperm.xlu1 %1376, %v1662_v0   ;;  %v515_v28 = vpop.f32.mrf.mxu3 }
  0x9e   :  { %v99_v2 = vpop.f32.mrf.mxu0  ;;  %187 = vperm.xlu0 %1370, %v1664_v1   ;;  %v516_v45 = vadd.f32 %v1642_v48, %v515_v28 }
  0x9f   :  { %v500_v3 = vpop.f32.mrf.mxu1  ;;  %v1673_v5 = vadd.f32 %v1636_v44, %v99_v2 }
  0xa0   :  { %v1676_v6 = vadd.f32 %v1642_v48, %v500_v3  ;;  %v1752_v47 = vmax.f32 %v516_v45, 0.0  ;;  %v1795_v3 = vld [vmem:[%s2445_s3 + $0x28] sm:$0xff] }
  0xa1   :  { %v1696_v15 = vpop.f32.mrf.mxu2  ;;  %v123_v51 = vmax.f32 %v1673_v5, 0.0 }
  0xa2   :  { %v1774_v60 = vmax.f32 %v1676_v6, 0.0 }
  0xa5   :  { %1377 = vset.pattern.permute.xlu2 %v2448_v39  ;;  %1379 = vset.pattern.permute.xlu1 %v2450_v57  ;;  %v518_v36 = vpop.f32.mrf.mxu3 }
  0xa6   :  { %v102_v9 = vpop.f32.mrf.mxu0  ;;  %376 = vperm.xlu2 %1377, %v1662_v0   ;;  %272 = vperm.xlu1 %1379, %v1653_v56   ;;  %v519_v61 = vadd.f32 %v1642_v48, %v518_v36  ;;  %v1844_v36 = vld [vmem:[%s2445_s3 + $0x40] sm:$0xff] }
  0xa7   :  { %v503_v10 = vpop.f32.mrf.mxu1  ;;  %v1688_v12 = vadd.f32 %v1636_v44, %v102_v9  ;;  %549 = vperm.xlu0 %1370, %v1680_v8  }
  0xa8   :  { %v1691_v13 = vadd.f32 %v1642_v48, %v503_v10  ;;  %v1783_v62 = vmax.f32 %v519_v61, 0.0  ;;  %v1864_v61 = vld [vmem:[%s2445_s3 + $0x20] sm:$0xff] }
  0xa9   :  { %v1708_v20 = vpop.f32.mrf.mxu2 }
  0xad   :  { %v919_v43 = vpop.f32.mrf.mxu3 }
  0xae   :  { %v105_v16 = vpop.f32.mrf.mxu0  ;;  %1378 = vset.pattern.permute.xlu2 %v2454_v40  ;;  %1381 = vset.pattern.permute.xlu1 %v2454_v40  ;;  %v920_v46 = vadd.f32 %v1725_v30, %v919_v43 }
  0xaf   :  { %v506_v17 = vpop.f32.mrf.mxu1  ;;  %v1701_v18 = vadd.f32 %v1636_v44, %v105_v16  ;;  %206 = vperm.xlu2 %1378, %v1653_v56   ;;  %608 = vperm.xlu1 %1381, %v1694_v14   ;;  %v899_v16 = vadd.f32 %v1725_v30, %v1678_v7 }
  0xb0   :  { %v1704_v19 = vadd.f32 %v1642_v48, %v506_v17  ;;  %v1754_v50 = vmax.f32 %v920_v46, 0.0  ;;  %v1818_v17 = vld [vmem:[%s2445_s3 + $0x8] sm:$0xff] }
  0xb1   :  { %v1728_v32 = vpop.f32.mrf.mxu2 }
  0xb2   :  { %v1790_v2 = vmax.f32 %v1704_v19, 0.0 }
  0xb6   :  { %v108_v21 = vpop.f32.mrf.mxu0 }
  0xb7   :  { %v509_v22 = vpop.f32.mrf.mxu1  ;;  %v109_v23 = vadd.f32 %v1636_v44, %v108_v21  ;;  %1380 = vset.pattern.permute.xlu2 %v2452_v41  ;;  %1383 = vset.pattern.permute.xlu1 %v2450_v57  ;;  %v1825_v21 = vld [vmem:[%s2445_s3 + $0x30] sm:$0xff] }
  0xb8   :  { %v1712_v24 = vadd.f32 %v1642_v48, %v509_v22  ;;  %544 = vperm.xlu2 %1380, %v1694_v14   ;;  %314 = vperm.xlu1 %1383, %v1664_v1  }
  0xb9   :  { %v1719_v26 = vmax.f32 %v109_v23, 0.0  ;;  %v910_v37 = vpop.f32.mrf.mxu2  ;;  %v1830_v23 = vmax.f32 %v899_v16, 0.0  ;;  %v1876_v16 = vld [vmem:[%s2445_s3 + $0x48] sm:$0xff] }
  0xba   :  { %v911_v38 = vadd.f32 %v1725_v30, %v910_v37 }
  0xbb   :  { %172 = vperm.xlu0 %1370, %v1719_v26  }
  0xbc   :  { %v1743_v42 = vmax.f32 %v911_v38, 0.0 }
  0xbe   :  { %v111_v52 = vpop.f32.mrf.mxu0 }
  0xbf   :  { %v512_v29 = vpop.f32.mrf.mxu1  ;;  %v112_v54 = vadd.f32 %v1636_v44, %v111_v52  ;;  %v922_v52 = vpop.f32.mrf.mxu3 }
  0xc0   :  { %v513_v31 = vadd.f32 %v1642_v48, %v512_v29  ;;  %1382 = vset.pattern.permute.xlu2 %v2454_v40  ;;  %1384 = vset.pattern.permute.xlu1 %v2452_v41  ;;  %v124_v48 = vmax.f32 %v1688_v12, 0.0 }
  0xc1   :  { %248 = vperm.xlu2 %1382, %v1664_v1   ;;  %147 = vperm.xlu1 %1384, %v122_v27   ;;  %v1771_v59 = vmax.f32 %v112_v54, 0.0  ;;  %v913_v28 = vpop.f32.mrf.mxu2  ;;  %v923_v54 = vadd.f32 %v1725_v30, %v922_v52 }
  0xc2   :  { %v1732_v33 = vmax.f32 %v513_v31, 0.0  ;;  %v1837_v31 = vld [vmem:[%s2445_s3 + $0x18] sm:$0xff]  ;;  %v914_v34 = vadd.f32 %v1725_v30, %v913_v28  ;;  %v1888_v28 = vld [vmem:[%s2445_s3 + $0xa8] sm:$0xff] }
  0xc3   :  { %2470 = vst [vmem:[#allocation6_spill] sm:$0xff] %v1888_v28 }
  0xc4   :  { %579 = vperm.xlu0 %1370, %v1732_v33   ;;  %v1848_v45 = vmax.f32 %v914_v34, 0.0 }
  0xc9   :  { %1385 = vset.pattern.permute.xlu2 %v2450_v57  ;;  %1386 = vset.pattern.permute.xlu1 %v2448_v39 }
  0xca   :  { %276 = vperm.xlu2 %1385, %v122_v27   ;;  %342 = vperm.xlu1 %1386, %v122_v27  }
  0xcc   :  { %943 = vperm.xlu0 %1370, %v1737_v35  }
  0xd2   :  { %1387 = vset.pattern.permute.xlu2 %v2454_v40  ;;  %1388 = vset.pattern.permute.xlu1 %v2450_v57 }
  0xd3   :  { %612 = vperm.xlu2 %1387, %v1680_v8   ;;  %678 = vperm.xlu1 %1388, %v1680_v8  }
  0xd4   :  { %973 = vperm.xlu0 %1370, %v1743_v42  }
  0xdb   :  { %1390 = vset.pattern.permute.xlu2 %v2450_v57  ;;  %1389 = vset.pattern.permute.xlu1 %v2452_v41 }
  0xdc   :  { %988 = vperm.xlu0 %1370, %v1754_v50   ;;  %712 = vperm.xlu2 %1390, %v1752_v47  }
  0xdd   :  { %584 = vperm.xlu1 %1389, %v1752_v47  }
  0xe4   :  { %1422 = vset.pattern.permute.xlu0 %v2454_v40  ;;  %1393 = vset.pattern.permute.xlu2 %v2448_v39 }
  0xe5   :  { %152 = vperm.xlu1 %1389, %v123_v51   ;;  %210 = vperm.xlu0 %1422, %v122_v27   ;;  %v1764_v53 = vpop.permute.xlu2 %334 }
  0xe6   :  { %346 = vperm.xlu2 %1393, %v123_v51  }
  0xed   :  { %1391 = vset.pattern.permute.xlu1 %v2454_v40  ;;  %240 = vperm.xlu0 %1422, %v1771_v59  }
  0xee   :  { %1396 = vset.pattern.permute.xlu2 %v2450_v57  ;;  %214 = vperm.xlu1 %1391, %v123_v51   ;;  %v1779_v44 = vpop.permute.xlu2 %670 }
  0xef   :  { %682 = vperm.xlu2 %1396, %v1774_v60  }
  0xf5   :  { %604 = vperm.xlu0 %1422, %v1651_v55  }
  0xf6   :  { %1392 = vset.pattern.permute.xlu1 %v2450_v57 }
  0xf7   :  { %1397 = vset.pattern.permute.xlu2 %v2452_v41  ;;  %280 = vperm.xlu1 %1392, %v123_v51   ;;  %v183_v63 = vpop.permute.xlu2 %182 }
  0xf8   :  { %589 = vperm.xlu2 %1397, %v1783_v62   ;;  %v193_v38 = vmul.f32 %v183_v63, %v1837_v31 }
  0xfd   :  { %634 = vperm.xlu0 %1422, %v1790_v2   ;;  %v203_v5 = vpop.permute.xlu1 %202 }
  0xfe   :  { %v221_v6 = vmul.f32 %v1795_v3, %v203_v5  ;;  %v138_v9 = vpop.permute.xlu0 %137 }
  0xff   :  { %v160_v10 = vmul.f32 %v138_v9, %v1801_v4  ;;  %1394 = vset.pattern.permute.xlu1 %v2452_v41  ;;  %v1869_v9 = vmax.f32 %v923_v54, 0.0  ;;  %v1915_v54 = vld [vmem:[%s2445_s3 + $0xb0] sm:$0xff] }
 0x100   :  { %157 = vperm.xlu2 %1397, %v124_v48   ;;  %554 = vperm.xlu1 %1394, %v1774_v60   ;;  %v1808_v11 = vpop.permute.xlu2 %376  ;;  %2473 = vst [vmem:[#allocation9_spill] sm:$0xff] %v1915_v54 }
 0x101   :  { %2467 = vst [vmem:[#allocation3_spill] sm:$0xff] %v1808_v11  ;;  %v1810_v12 = vadd.f32 %v221_v6, %v160_v10  ;;  %v1867_v6 = vmax.f32 %v1691_v13, 0.0 }
 0x102   :  { %2469 = vst [vmem:[#allocation5_spill] sm:$0xff] %v1869_v9 }
 0x105   :  { %646 = vperm.xlu0 %1422, %v1752_v47  }
 0x106   :  { %v1820_v19 = vpop.permute.xlu1 %539 }
 0x107   :  { %v143_v22 = vpop.permute.xlu0 %142 }
 0x108   :  { %1398 = vset.pattern.permute.xlu2 %v2454_v40  ;;  %1395 = vset.pattern.permute.xlu1 %v2454_v40  ;;  %v161_v7 = vmul.f32 %v143_v22, %v1818_v17 }
 0x109   :  { %218 = vperm.xlu2 %1398, %v124_v48   ;;  %616 = vperm.xlu1 %1395, %v1774_v60   ;;  %v207_v25 = vpop.permute.xlu2 %206 }
 0x10a   :  { %v222_v27 = vmul.f32 %v1825_v21, %v207_v25 }
 0x10c   :  { %v227_v29 = vadd.f32 %v222_v27, %v161_v7 }
 0x10d   :  { %1012 = vperm.xlu0 %1422, %v1830_v23  }
 0x10f   :  { %v245_v37 = vpop.permute.xlu1 %244 }
 0x110   :  { %v254_v43 = vmul.f32 %v1844_v36, %v245_v37  ;;  %v188_v63 = vpop.permute.xlu0 %187 }
 0x111   :  { %1399 = vset.pattern.permute.xlu2 %v2450_v57  ;;  %650 = vperm.xlu1 %1395, %v1783_v62   ;;  %v194_v22 = vmul.f32 %v188_v63, %v1864_v61  ;;  %v1918_v63 = vmax.f32 %v1701_v18, 0.0 }
 0x112   :  { %v1852_v46 = vadd.f32 %v254_v43, %v193_v38  ;;  %284 = vperm.xlu2 %1399, %v124_v48   ;;  %v545_v51 = vpop.permute.xlu2 %544 }
 0x113   :  { %v563_v34 = vmul.f32 %v1888_v28, %v545_v51  ;;  %v1910_v51 = vld [vmem:[%s2445_s3 + $0x70] sm:$0xff]  ;;  %v2483_v28 = vmov 3  }
 0x114   :  { %2468 = vst [vmem:[#allocation4_spill] sm:$0xff] %v1852_v46 }
 0x115   :  { %1042 = vperm.xlu0 %1422, %v1848_v45  }
 0x118   :  { %v273_v5 = vpop.permute.xlu1 %272 }
 0x119   :  { %1400 = vset.pattern.permute.xlu1 %v2448_v39  ;;  %v288_v10 = vmul.f32 %v1859_v58, %v273_v5  ;;  %v550_v38 = vpop.permute.xlu0 %549 }
 0x11a   :  { %1401 = vset.pattern.permute.xlu2 %v2452_v41  ;;  %350 = vperm.xlu1 %1400, %v124_v48   ;;  %v1893_v48 = vld [vmem:[%s2445_s3 + $0xd0] sm:$0xff] }
 0x11b   :  { %v1880_v7 = vadd.f32 %v288_v10, %v227_v29  ;;  %559 = vperm.xlu2 %1401, %v1867_v6   ;;  %v249_v13 = vpop.permute.xlu2 %248  ;;  %2471 = vst [vmem:[#allocation7_spill] sm:$0xff] %v1893_v48 }
 0x11c   :  { %v255_v25 = vmul.f32 %v1876_v16, %v249_v13 }
 0x11d   :  { %1054 = vperm.xlu0 %1422, %v1869_v9  }
 0x11e   :  { %v260_v27 = vadd.f32 %v255_v25, %v194_v22  ;;  %v564_v22 = vmul.f32 %v1915_v54, %v550_v38 }
 0x121   :  { %v609_v29 = vpop.permute.xlu1 %608 }
 0x122   :  { %1403 = vset.pattern.permute.xlu1 %v2450_v57  ;;  %v624_v37 = vmul.f32 %v1893_v48, %v609_v29 }
 0x123   :  { %1402 = vset.pattern.permute.xlu2 %v2454_v40  ;;  %686 = vperm.xlu1 %1403, %v1867_v6  }
 0x124   :  { %v1900_v43 = vadd.f32 %v624_v37, %v563_v34  ;;  %620 = vperm.xlu2 %1402, %v1867_v6   ;;  %v1903_v52 = vpop.permute.xlu2 %276 }
 0x125   :  { %1425 = vset.pattern.permute.xlu0 %v2448_v39 }
 0x126   :  { %2472 = vst [vmem:[#allocation8_spill] sm:$0xff] %v1900_v43  ;;  %338 = vperm.xlu0 %1425, %v1653_v56   ;;  %v1925_v56 = vld [vmem:[%s2445_s3 + $0xd8] sm:$0xff] }
 0x127   :  { %2474 = vst [vmem:[#allocation10_spill] sm:$0xff] %v1925_v56 }
 0x12a   :  { %v315_v5 = vpop.permute.xlu1 %314 }
 0x12b   :  { %1405 = vset.pattern.permute.xlu1 %v2454_v40  ;;  %v321_v10 = vmul.f32 %v1910_v51, %v315_v5 }
 0x12c   :  { %1404 = vset.pattern.permute.xlu2 %v2452_v41  ;;  %232 = vperm.xlu1 %1405, %v1918_v63  }
 0x12d   :  { %v1930_v13 = vadd.f32 %v321_v10, %v260_v27  ;;  %167 = vperm.xlu2 %1404, %v1918_v63   ;;  %v613_v18 = vpop.permute.xlu2 %612  ;;  %v1933_v25 = vpop.permute.xlu0 %172 }
 0x12e   :  { %v625_v29 = vmul.f32 %v1925_v56, %v613_v18  ;;  %368 = vperm.xlu0 %1425, %v1719_v26   ;;  %v2008_v56 = vld [vmem:[%s2445_s3 + $0x88] sm:$0xff] }
 0x12f   :  { %2475 = vst [vmem:[#allocation11_spill] sm:$0xff] %v1930_v13 }
 0x130   :  { %v630_v34 = vadd.f32 %v625_v29, %v564_v22  ;;  %v1961_v29 = vmax.f32 %v1712_v24, 0.0 }
 0x133   :  { %v148_v37 = vpop.permute.xlu1 %147 }
 0x134   :  { %1407 = vset.pattern.permute.xlu1 %v2452_v41 }
 0x135   :  { %1406 = vset.pattern.permute.xlu2 %v2448_v39  ;;  %569 = vperm.xlu1 %1407, %v1790_v2  }
 0x136   :  { %v1940_v38 = vpop.permute.xlu0 %579  ;;  %364 = vperm.xlu2 %1406, %v1918_v63   ;;  %380 = vperm.xlu0 %1425, %v1664_v1   ;;  %v1944_v27 = vpop.permute.xlu2 %712  ;;  %v1958_v1 = vld [vmem:[%s2445_s3 + $0x100] sm:$0xff] }
 0x137   :  { %2476 = vst [vmem:[#allocation12_spill] sm:$0xff] %v1940_v38 }
 0x138   :  { %2478 = vst [vmem:[#allocation14_spill] sm:$0xff] %v1958_v1 }
 0x13c   :  { %v343_v5 = vpop.permute.xlu1 %342 }
 0x13d   :  { %1410 = vset.pattern.permute.xlu1 %v2450_v57 }
 0x13e   :  { %v1947_v10 = vpop.permute.xlu0 %943  ;;  %1408 = vset.pattern.permute.xlu2 %v2450_v57  ;;  %302 = vperm.xlu1 %1410, %v1719_v26  }
 0x13f   :  { %2477 = vst [vmem:[#allocation13_spill] sm:$0xff] %v1947_v10  ;;  %744 = vperm.xlu0 %1425, %v1680_v8   ;;  %700 = vperm.xlu2 %1408, %v1790_v2  }
 0x140   :  { %v1953_v22 = vpop.permute.xlu2 %346 }
 0x145   :  { %v679_v18 = vpop.permute.xlu1 %678 }
 0x146   :  { %1412 = vset.pattern.permute.xlu1 %v2454_v40  ;;  %v691_v39 = vmul.f32 %v1958_v1, %v679_v18  ;;  %v1965_v57 = vpop.permute.xlu0 %973  ;;  %v2481_v18 = vmov 0  }
 0x147   :  { %2479 = vst [vmem:[#allocation15_spill] sm:$0xff] %v1965_v57  ;;  %774 = vperm.xlu0 %1425, %v1732_v33   ;;  %1409 = vset.pattern.permute.xlu2 %v2454_v40  ;;  %v1999_v40 = vld [vmem:[%s2445_s3 + $0x60] sm:$0xff] }
 0x148   :  { %v1969_v8 = vadd.f32 %v691_v39, %v630_v34  ;;  %638 = vperm.xlu1 %1412, %v1961_v29   ;;  %236 = vperm.xlu2 %1409, %v1719_v26   ;;  %v1989_v26 = vld [vmem:[%s2445_s3 + $0x10] sm:$0xff]  ;;  %v1994_v34 = vld [vmem:[%s2445_s3 + $0x38] sm:$0xff]  ;;  %v289_v48 = vmul.f32 %v1999_v40, %v1903_v52 }
 0x149   :  { %v1973_v41 = vpop.permute.xlu2 %682  ;;  %v162_v54 = vmul.f32 %v148_v37, %v1989_v26  ;;  %v355_v37 = vmul.f32 %v2008_v56, %v343_v5 }
 0x14e   :  { %v1975_v24 = vpop.permute.xlu0 %988 }
 0x14f   :  { %2480 = vst [vmem:[#allocation16_spill] sm:$0xff] %v1975_v24  ;;  %1144 = vperm.xlu0 %1425, %v1830_v23   ;;  %v1978_v10 = vpop.permute.xlu1 %584  ;;  %v2482_v24 = vmov 2  }
 0x150   :  { %1413 = vset.pattern.permute.xlu1 %v2481_v18  ;;  %1411 = vset.pattern.permute.xlu2 %v2481_v18 }
 0x151   :  { %177 = vperm.xlu1 %1413, %v1771_v59   ;;  %574 = vperm.xlu2 %1411, %v1961_v29  }
 0x152   :  { %v1984_v39 = vpop.permute.xlu2 %589 }
 0x157   :  { %1429 = vset.pattern.permute.xlu0 %v2482_v24  ;;  %v153_v57 = vpop.permute.xlu1 %152  ;;  %v211_v1 = vpop.permute.xlu0 %210 }
 0x158   :  { %268 = vperm.xlu0 %1429, %v1644_v49   ;;  %v223_v38 = vmul.f32 %v1994_v34, %v211_v1  ;;  %v163_v4 = vmul.f32 %v153_v57, %v1837_v31  ;;  %v2033_v57 = vld [vmem:[%s2445_s3 + $0xa0] sm:$0xff] }
 0x159   :  { %1415 = vset.pattern.permute.xlu1 %v2483_v28  ;;  %1414 = vset.pattern.permute.xlu2 %v2482_v24 }
 0x15a   :  { %v228_v43 = vadd.f32 %v223_v38, %v162_v54  ;;  %372 = vperm.xlu1 %1415, %v1771_v59   ;;  %306 = vperm.xlu2 %1414, %v1771_v59   ;;  %v158_v49 = vpop.permute.xlu2 %157  ;;  %v2484_v59 = vmov 1  }
 0x15b   :  { %v164_v54 = vmul.f32 %v158_v49, %v1864_v61  ;;  %v562_v61 = vmul.f32 %v2033_v57, %v1820_v19 }
 0x15c   :  { %v294_v1 = vadd.f32 %v289_v48, %v228_v43 }
 0x15e   :  { %v2017_v13 = vadd.f32 %v355_v37, %v294_v1  ;;  %v2060_v1 = vld [vmem:[%s2445_s3 + $0x90] sm:$0xff] }
 0x15f   :  { %v2019_v46 = vpop.permute.xlu0 %240 }
 0x160   :  { %298 = vperm.xlu0 %1429, %v1918_v63   ;;  %v215_v11 = vpop.permute.xlu1 %214 }
 0x161   :  { %v224_v52 = vmul.f32 %v1844_v36, %v215_v11  ;;  %v2038_v11 = vld [vmem:[%s2445_s3 + $0xc8] sm:$0xff] }
 0x162   :  { %1417 = vset.pattern.permute.xlu1 %v2482_v24  ;;  %1416 = vset.pattern.permute.xlu2 %v2484_v59  ;;  %v2048_v36 = vld [vmem:[%s2445_s3 + $0x68] sm:$0xff] }
 0x163   :  { %v229_v38 = vadd.f32 %v224_v52, %v163_v4  ;;  %708 = vperm.xlu1 %1417, %v1732_v33   ;;  %642 = vperm.xlu2 %1416, %v1732_v33   ;;  %v219_v48 = vpop.permute.xlu2 %218  ;;  %v2043_v4 = vld [vmem:[%s2445_s3 + $0xf0] sm:$0xff] }
 0x164   :  { %v225_v43 = vmul.f32 %v1876_v16, %v219_v48  ;;  %v689_v5 = vmul.f32 %v2043_v4, %v1779_v44 }
 0x166   :  { %v230_v31 = vadd.f32 %v225_v43, %v164_v54 }
 0x167   :  { %v605_v33 = vpop.permute.xlu0 %604 }
 0x168   :  { %310 = vperm.xlu0 %1429, %v1662_v0   ;;  %v623_v16 = vmul.f32 %v2038_v11, %v605_v33  ;;  %v356_v0 = vmul.f32 %v2060_v1, %v1953_v22 }
 0x169   :  { %v281_v63 = vpop.permute.xlu1 %280 }
 0x16a   :  { %v628_v49 = vadd.f32 %v623_v16, %v562_v61  ;;  %v290_v37 = vmul.f32 %v2048_v36, %v281_v63 }
 0x16b   :  { %1418 = vset.pattern.permute.xlu1 %v2483_v28  ;;  %1419 = vset.pattern.permute.xlu2 %v2483_v28 }
 0x16c   :  { %v295_v19 = vadd.f32 %v290_v37, %v229_v38  ;;  %736 = vperm.xlu1 %1418, %v1651_v55   ;;  %740 = vperm.xlu2 %1419, %v1694_v14   ;;  %v285_v44 = vpop.permute.xlu2 %284  ;;  %v2068_v52 = vadd.f32 %v689_v5, %v628_v49  ;;  %v1287_v55 = vld [vmem:[%s2445_s3 + $0xb8] sm:$0xff]  ;;  %v1297_v38 = vld [vmem:[%s2445_s3 + $0x108] sm:$0xff] }
 0x16d   :  { %v291_v54 = vmul.f32 %v1910_v51, %v285_v44  ;;  %v1292_v51 = vld [vmem:[%s2445_s3 + $0xe0] sm:$0xff]  ;;  %v1293_v37 = vld [vmem:[%s2445_s3 + $0xe8] sm:$0xff] }
 0x16e   :  { %v2071_v48 = vadd.f32 %v356_v0, %v295_v19 }
 0x16f   :  { %v296_v43 = vadd.f32 %v291_v54, %v230_v31  ;;  %v2073_v33 = vpop.permute.xlu0 %634 }
 0x170   :  { %674 = vperm.xlu0 %1429, %v1694_v14   ;;  %v595_v14 = vmul.f32 %v1287_v55, %v1978_v10  ;;  %v692_v10 = vmul.f32 %v1297_v38, %v1973_v41 }
 0x172   :  { %v555_v61 = vpop.permute.xlu1 %554 }
 0x173   :  { %v565_v5 = vmul.f32 %v1287_v55, %v555_v61 }
 0x174   :  { %748 = vperm.xlu1 %1418, %v1774_v60   ;;  %752 = vperm.xlu2 %1419, %v1867_v6   ;;  %v722_v6 = vmul.f32 %v1297_v38, %v1944_v27  ;;  %v1288_v27 = vld [vmem:[%s2445_s3 + $0xc0] sm:$0xff] }
 0x175   :  { %v560_v22 = vpop.permute.xlu2 %559  ;;  %v596_v41 = vmul.f32 %v1288_v27, %v1984_v39 }
 0x176   :  { %v566_v54 = vmul.f32 %v1288_v27, %v560_v22  ;;  %v916_v22 = vpop.f32.mrf.mxu2 }
 0x177   :  { %v647_v31 = vpop.permute.xlu0 %646 }
 0x178   :  { %704 = vperm.xlu0 %1429, %v1961_v29   ;;  %v656_v60 = vmul.f32 %v1292_v51, %v647_v31 }
 0x17a   :  { %v661_v16 = vadd.f32 %v656_v60, %v595_v14 }
 0x17b   :  { %v617_v63 = vpop.permute.xlu1 %616 }
 0x17c   :  { %766 = vperm.xlu1 %1418, %v1790_v2   ;;  %v626_v49 = vmul.f32 %v1292_v51, %v617_v63  ;;  %770 = vperm.xlu2 %1419, %v1961_v29   ;;  %v2095_v0 = vadd.f32 %v722_v6, %v661_v16  ;;  %v902_v51 = vadd.f32 %v1725_v30, %v1696_v15 }
 0x17d   :  { %v917_v15 = vadd.f32 %v1725_v30, %v916_v22 }
 0x17e   :  { %2485 = vst [vmem:[#allocation17_spill] sm:$0xff] %v2095_v0  ;;  %v631_v19 = vadd.f32 %v626_v49, %v565_v5  ;;  %v621_v44 = vpop.permute.xlu2 %620  ;;  %v2111_v14 = vmax.f32 %v902_v51, 0.0  ;;  %v905_v5 = vadd.f32 %v1725_v30, %v1708_v20  ;;  %v908_v49 = vadd.f32 %v1725_v30, %v1728_v32 }
 0x17f   :  { %v627_v61 = vmul.f32 %v1293_v37, %v621_v44  ;;  %v2101_v2 = vpop.permute.xlu0 %1012  ;;  %v2126_v39 = vmax.f32 %v917_v15, 0.0  ;;  %v2151_v44 = vld [vmem:[%s2445_s3 + $0x110] sm:$0xff] }
 0x180   :  { %2486 = vst [vmem:[#allocation18_spill] sm:$0xff] %v2101_v2  ;;  %716 = vperm.xlu0 %1429, %v1783_v62   ;;  %v2104_v29 = vadd.f32 %v692_v10, %v631_v19  ;;  %v2144_v27 = vmax.f32 %v905_v5, 0.0  ;;  %v2146_v19 = vmax.f32 %v908_v49, 0.0 }
 0x181   :  { %v632_v55 = vadd.f32 %v627_v61, %v566_v54  ;;  %2489 = vst [vmem:[#allocation21_spill] sm:$0xff] %v2126_v39 }
 0x182   :  { %2491 = vst [vmem:[#allocation23_spill] sm:$0xff] %v2151_v44 }
 0x183   :  { %v651_v31 = vpop.permute.xlu1 %650 }
 0x184   :  { %778 = vperm.xlu1 %1418, %v1752_v47   ;;  %v657_v38 = vmul.f32 %v1293_v37, %v651_v31  ;;  %782 = vperm.xlu2 %1419, %v1783_v62   ;;  %v2124_v47 = vld [vmem:[%s2445_s3 + $0x98] sm:$0xff] }
 0x186   :  { %v2113_v60 = vadd.f32 %v657_v38, %v596_v41  ;;  %v653_v41 = vmul.f32 %v2038_v11, %v2073_v33 }
 0x187   :  { %v2115_v6 = vpop.permute.xlu2 %167  ;;  %v2117_v16 = vpop.permute.xlu0 %1042 }
 0x188   :  { %2487 = vst [vmem:[#allocation19_spill] sm:$0xff] %v2113_v60  ;;  %1082 = vperm.xlu0 %1429, %v2111_v14  }
 0x189   :  { %2488 = vst [vmem:[#allocation20_spill] sm:$0xff] %v2117_v16 }
 0x18c   :  { %1420 = vset.pattern.permute.xlu1 %v2481_v18  ;;  %1421 = vset.pattern.permute.xlu2 %v2481_v18  ;;  %v351_v62 = vpop.permute.xlu1 %350 }
 0x18d   :  { %948 = vperm.xlu1 %1420, %v1830_v23   ;;  %v357_v63 = vmul.f32 %v2124_v47, %v351_v62  ;;  %953 = vperm.xlu2 %1421, %v2111_v14  }
 0x18f   :  { %v2137_v37 = vadd.f32 %v357_v63, %v296_v43  ;;  %v2139_v10 = vpop.permute.xlu0 %1054  ;;  %v2184_v63 = vld [vmem:[%s2445_s3 + $0x128] sm:$0xff] }
 0x190   :  { %2490 = vst [vmem:[#allocation22_spill] sm:$0xff] %v2139_v10  ;;  %1112 = vperm.xlu0 %1429, %v2126_v39   ;;  %v2142_v18 = vpop.permute.xlu2 %364 }
 0x191   :  { %2492 = vst [vmem:[#allocation24_spill] sm:$0xff] %v2184_v63 }
 0x195   :  { %958 = vperm.xlu1 %1420, %v2144_v27   ;;  %963 = vperm.xlu2 %1421, %v2146_v19   ;;  %v687_v20 = vpop.permute.xlu1 %686 }
 0x196   :  { %v693_v30 = vmul.f32 %v2151_v44, %v687_v20 }
 0x198   :  { %v2156_v32 = vadd.f32 %v693_v30, %v632_v55  ;;  %1120 = vperm.xlu0 %1429, %v1869_v9   ;;  %v339_v43 = vpop.permute.xlu0 %338 }
 0x199   :  { %v2159_v54 = vpop.permute.xlu2 %700 }
 0x19d   :  { %978 = vperm.xlu1 %1420, %v1848_v45   ;;  %983 = vperm.xlu2 %1421, %v2126_v39  }
 0x19e   :  { %v233_v61 = vpop.permute.xlu1 %232 }
 0x1a0   :  { %v2163_v51 = vpop.permute.xlu0 %368  ;;  %1431 = vset.pattern.permute.xlu0 %v2483_v28 }
 0x1a2   :  { %v237_v31 = vpop.permute.xlu2 %236 }
 0x1a3   :  { %v252_v16 = vmul.f32 %v1825_v21, %v237_v31 }
 0x1a5   :  { %993 = vperm.xlu1 %1420, %v1869_v9   ;;  %1423 = vset.pattern.permute.xlu2 %v2484_v59 }
 0x1a6   :  { %1008 = vperm.xlu2 %1423, %v1737_v35  }
 0x1a7   :  { %v570_v55 = vpop.permute.xlu1 %569 }
 0x1a8   :  { %v592_v38 = vmul.f32 %v2033_v57, %v570_v55  ;;  %v2172_v22 = vpop.permute.xlu0 %380 }
 0x1aa   :  { %v2174_v15 = vadd.f32 %v653_v41, %v592_v38  ;;  %v1254_v38 = vld [vmem:[%s2445_s3 + $0x80] sm:$0xff] }
 0x1ab   :  { %v2176_v62 = vpop.permute.xlu2 %574 }
 0x1ad   :  { %1424 = vset.pattern.permute.xlu1 %v2484_v59 }
 0x1ae   :  { %1016 = vperm.xlu1 %1424, %v2111_v14   ;;  %1020 = vperm.xlu2 %1423, %v2144_v27  }
 0x1b0   :  { %v303_v11 = vpop.permute.xlu1 %302 }
 0x1b1   :  { %v745_v33 = vpop.permute.xlu0 %744  ;;  %v318_v44 = vmul.f32 %v1859_v58, %v303_v11 }
 0x1b2   :  { %v757_v57 = vmul.f32 %v2184_v63, %v745_v33  ;;  %v1248_v33 = vld [vmem:[%s2445_s3 + $0x50] sm:$0xff] }
 0x1b4   :  { %v2188_v5 = vadd.f32 %v757_v57, %v1969_v8  ;;  %v307_v49 = vpop.permute.xlu2 %306  ;;  %v1253_v57 = vld [vmem:[%s2445_s3 + $0x78] sm:$0xff] }
 0x1b5   :  { %v353_v2 = vmul.f32 %v1253_v57, %v1764_v53 }
 0x1b6   :  { %1024 = vperm.xlu1 %1424, %v2146_v19   ;;  %1038 = vperm.xlu2 %1423, %v1743_v42  }
 0x1b9   :  { %v2192_v59 = vpop.permute.xlu0 %774 }
 0x1ba   :  { %v2194_v20 = vpop.permute.xlu1 %638 }
 0x1bd   :  { %v2196_v30 = vpop.permute.xlu2 %642 }
 0x1be   :  { %1046 = vperm.xlu1 %1424, %v2126_v39   ;;  %1050 = vperm.xlu2 %1423, %v1754_v50  }
 0x1c1   :  { %v2200_v55 = vpop.permute.xlu0 %1144 }
 0x1c2   :  { %2493 = vst [vmem:[#allocation25_spill] sm:$0xff] %v2200_v55  ;;  %v354_v55 = vmul.f32 %v1254_v38, %v339_v43  ;;  %v251_v43 = vmul.f32 %v1795_v3, %v233_v61 }
 0x1c3   :  { %v178_v41 = vpop.permute.xlu1 %177 }
 0x1c4   :  { %v359_v60 = vadd.f32 %v354_v55, %v1880_v7 }
 0x1c6   :  { %1426 = vset.pattern.permute.xlu1 %v2482_v24  ;;  %1427 = vset.pattern.permute.xlu2 %v2482_v24  ;;  %v2204_v8 = vpop.permute.xlu2 %740 }
 0x1c7   :  { %1074 = vperm.xlu1 %1426, %v1737_v35   ;;  %1078 = vperm.xlu2 %1427, %v1830_v23   ;;  %v191_v23 = vmul.f32 %v1933_v25, %v1818_v17  ;;  %v2494_v17 = vld [vmem:[#allocation2_spill] sm:$0xff] }
 0x1c8   :  { %v190_v21 = vmul.f32 %v2115_v6, %v2494_v17 }
 0x1c9   :  { %v257_v53 = vadd.f32 %v252_v16, %v191_v23  ;;  %v319_v16 = vmul.f32 %v1999_v40, %v307_v49 }
 0x1ca   :  { %v269_v24 = vpop.permute.xlu0 %268 }
 0x1cb   :  { %v287_v10 = vmul.f32 %v1248_v33, %v269_v24  ;;  %v192_v24 = vmul.f32 %v178_v41, %v1989_v26  ;;  %v323_v58 = vadd.f32 %v318_v44, %v257_v53  ;;  %v387_v41 = vmul.f32 %v2124_v47, %v2172_v22  ;;  %v1300_v53 = vld [vmem:[%s2445_s3 + $0x120] sm:$0xff] }
 0x1cc   :  { %v373_v9 = vpop.permute.xlu1 %372 }
 0x1cd   :  { %v292_v0 = vadd.f32 %v287_v10, %v1810_v12  ;;  %v253_v12 = vmul.f32 %v1994_v34, %v2019_v46  ;;  %v256_v10 = vadd.f32 %v251_v43, %v190_v21  ;;  %v385_v46 = vmul.f32 %v2008_v56, %v373_v9  ;;  %v2495_v56 = vld [vmem:[#allocation3_spill] sm:$0xff] }
 0x1ce   :  { %v2224_v39 = vpop.permute.xlu2 %752  ;;  %v386_v55 = vmul.f32 %v2060_v1, %v2495_v56  ;;  %v2497_v1 = vld [vmem:[#allocation11_spill] sm:$0xff] }
 0x1cf   :  { %v358_v63 = vadd.f32 %v353_v2, %v292_v0  ;;  %1086 = vperm.xlu1 %1426, %v2144_v27   ;;  %1090 = vperm.xlu2 %1427, %v2146_v19   ;;  %v258_v31 = vadd.f32 %v253_v12, %v192_v24  ;;  %v383_v0 = vmul.f32 %v1253_v57, %v2142_v18  ;;  %v1299_v24 = vld [vmem:[%s2445_s3 + $0x118] sm:$0xff] }
 0x1d0   :  { %v384_v2 = vmul.f32 %v1254_v38, %v2163_v51  ;;  %v392_v47 = vadd.f32 %v387_v41, %v2497_v1 }
 0x1d1   :  { %v393_v7 = vadd.f32 %v359_v60, %v358_v63  ;;  %v324_v11 = vadd.f32 %v319_v16, %v258_v31  ;;  %v1303_v16 = vld [vmem:[%s2445_s3 + $0x138] sm:$0xff] }
 0x1d2   :  { %v299_v25 = vpop.permute.xlu0 %298  ;;  %v389_v60 = vadd.f32 %v384_v2, %v323_v58 }
 0x1d3   :  { %v394_v3 = vadd.f32 %v393_v7, %v2017_v13  ;;  %v317_v26 = vmul.f32 %v1248_v33, %v299_v25  ;;  %v390_v18 = vadd.f32 %v385_v46, %v324_v11  ;;  %v2269_v25 = vld [vmem:[%s2445_s3 + $0x130] sm:$0xff]  ;;  %v2500_v11 = vld [vmem:[#allocation6_spill] sm:$0xff] }
 0x1d5   :  { %v395_v61 = vadd.f32 %v394_v3, %v2071_v48  ;;  %v322_v34 = vadd.f32 %v317_v26, %v256_v10  ;;  %v709_v6 = vpop.permute.xlu1 %708  ;;  %v756_v10 = vmul.f32 %v1300_v53, %v2204_v8  ;;  %v2498_v3 = vld [vmem:[#allocation8_spill] sm:$0xff] }
 0x1d6   :  { %v2240_v44 = vpop.permute.xlu2 %770 }
 0x1d7   :  { %v396_v63 = vadd.f32 %v395_v61, %v2137_v37  ;;  %v388_v13 = vadd.f32 %v383_v0, %v322_v34  ;;  %1104 = vperm.xlu1 %1426, %v1743_v42   ;;  %1108 = vperm.xlu2 %1427, %v1848_v45   ;;  %v2496_v37 = vld [vmem:[#allocation4_spill] sm:$0xff] }
 0x1d9   :  { %v403_v51 = vadd.f32 %v389_v60, %v388_v13  ;;  %v397_v40 = vrot.slane %v396_v63, 4  ;;  %v593_v13 = vmul.f32 %v2500_v11, %v2176_v62 }
 0x1da   :  { %v311_v49 = vpop.permute.xlu0 %310 }
 0x1db   :  { %v404_v48 = vadd.f32 %v403_v51, %v390_v18  ;;  %v320_v9 = vmul.f32 %v2048_v36, %v311_v49  ;;  %v398_v33 = vadd.f32 %v397_v40, %v396_v63  ;;  %v1295_v36 = vld [vmem:[%s2445_s3 + $0xf8] sm:$0xff]  ;;  %v759_v51 = vmul.f32 %v1303_v16, %v2224_v39 }
 0x1dc   :  { %v719_v39 = vmul.f32 %v2043_v4, %v2159_v54 }
 0x1dd   :  { %v325_v38 = vadd.f32 %v320_v9, %v2496_v37  ;;  %v399_v12 = vrot.slane %v398_v33, 2 }
 0x1de   :  { %v737_v57 = vpop.permute.xlu1 %736  ;;  %v2251_v23 = vpop.permute.xlu2 %782 }
 0x1df   :  { %v391_v43 = vadd.f32 %v386_v55, %v325_v38  ;;  %1116 = vperm.xlu1 %1426, %v1754_v50   ;;  %1428 = vset.pattern.permute.xlu2 %v2483_v28  ;;  %v755_v7 = vmul.f32 %v1299_v24, %v737_v57  ;;  %v400_v2 = vadd.f32 %v399_v12, %v398_v33  ;;  %v2504_v55 = vld [vmem:[#allocation14_spill] sm:$0xff] }
 0x1e0   :  { %1140 = vperm.xlu2 %1428, %v1737_v35   ;;  %v2499_v35 = vld [vmem:[#allocation7_spill] sm:$0xff]  ;;  %v721_v41 = vmul.f32 %v2504_v55, %v709_v6  ;;  %v1435_v6 = vld [vmem:[%s2446_s4] ss:$0 sm:$0xff] }
 0x1e1   :  { %v405_v22 = vadd.f32 %v404_v48, %v391_v43  ;;  %v654_v0 = vmul.f32 %v2499_v35, %v2194_v20  ;;  %v760_v34 = vadd.f32 %v755_v7, %v2068_v52  ;;  %v2501_v20 = vld [vmem:[#allocation10_spill] sm:$0xff]  ;;  %v2502_v52 = vld [vmem:[#allocation12_spill] sm:$0xff]  ;;  %v2503_v48 = vld [vmem:[#allocation9_spill] sm:$0xff]  ;;  %v401_v56 = vrot.slane %v400_v2, 1 }
 0x1e2   :  { %v675_v17 = vpop.permute.xlu0 %674  ;;  %v655_v18 = vmul.f32 %v2501_v20, %v2196_v30  ;;  %v594_v9 = vmul.f32 %v2503_v48, %v2502_v52 }
 0x1e3   :  { %v406_v21 = vadd.f32 %v405_v22, %v392_v47  ;;  %v690_v58 = vmul.f32 %v1295_v36, %v675_v17  ;;  %v786_v22 = vmul.f32 %v1300_v53, %v2240_v44 }
 0x1e4   :  { %v660_v33 = vadd.f32 %v655_v18, %v594_v9  ;;  %v1338_v18 = vld [vmem:[%s2445_s3 + $0x170] sm:$0xff] }
 0x1e5   :  { %v407_v31 = vrot.slane %v406_v21, 4  ;;  %v695_v26 = vadd.f32 %v690_v58, %v2498_v3  ;;  %v2506_v58 = vld [vmem:[#allocation21_spill] sm:$0xff] }
 0x1e6   :  { %v749_v61 = vpop.permute.xlu1 %748  ;;  %v726_v47 = vadd.f32 %v721_v41, %v660_v33 }
 0x1e7   :  { %v408_v46 = vadd.f32 %v407_v31, %v406_v21  ;;  %v761_v60 = vadd.f32 %v756_v10, %v695_v26  ;;  %v758_v63 = vmul.f32 %v2269_v25, %v749_v61  ;;  %1430 = vset.pattern.permute.xlu1 %v2483_v28  ;;  %v2281_v8 = vpop.permute.xlu2 %953  ;;  %v659_v28 = vadd.f32 %v654_v0, %v593_v13  ;;  %v2507_v26 = vld [vmem:[#allocation23_spill] sm:$0xff] }
 0x1e8   :  { %1170 = vperm.xlu1 %1430, %v1743_v42   ;;  %1174 = vperm.xlu2 %1428, %v1848_v45   ;;  %v764_v45 = vadd.f32 %v759_v51, %v2156_v32  ;;  %v2505_v32 = vld [vmem:[#allocation24_spill] sm:$0xff] }
 0x1e9   :  { %v409_v40 = vrot.slane %v408_v46, 2  ;;  %v795_v49 = vadd.f32 %v761_v60, %v760_v34  ;;  %v763_v38 = vadd.f32 %v758_v63, %v2104_v29  ;;  %v787_v21 = vmul.f32 %v2505_v32, %v2192_v59  ;;  %v2508_v59 = vld [vmem:[#allocation19_spill] sm:$0xff]  ;;  %v2509_v63 = vld [vmem:[#allocation17_spill] sm:$0xff]  ;;  %v2513_v32 = vld [vmem:[#allocation20_spill] sm:$0xff] }
 0x1ea   :  { %v705_v37 = vpop.permute.xlu0 %704  ;;  %v789_v34 = vmul.f32 %v1303_v16, %v2251_v23 }
 0x1eb   :  { %v410_v62 = vadd.f32 %v409_v40, %v408_v46  ;;  %v796_v30 = vadd.f32 %v795_v49, %v2188_v5  ;;  %v720_v42 = vmul.f32 %v1295_v36, %v705_v37  ;;  %v724_v5 = vadd.f32 %v719_v39, %v2174_v15  ;;  %v2510_v49 = vld [vmem:[#allocation18_spill] sm:$0xff]  ;;  %v2512_v37 = vld [vmem:[#allocation5_spill] sm:$0xff] }
 0x1ec   :  { %v402_v36 = vadd.f32 %v401_v56, %v400_v2  ;;  %v792_v15 = vadd.f32 %v787_v21, %v726_v47  ;;  %v1028_v52 = vmul.f32 %v1338_v18, %v2510_v49  ;;  %v1058_v21 = vmul.f32 %v1338_v18, %v2513_v32 }
 0x1ed   :  { %v411_v57 = vrot.slane %v410_v62, 1  ;;  %v797_v43 = vadd.f32 %v796_v30, %v763_v38  ;;  %v725_v1 = vadd.f32 %v720_v42, %v659_v28  ;;  %v2511_v28 = vld [vmem:[#allocation13_spill] sm:$0xff] }
 0x1ee   :  { %v767_v29 = vpop.permute.xlu1 %766 }
 0x1ef   :  { %v412_v12 = vadd.f32 %v411_v57, %v410_v62  ;;  %v798_v17 = vadd.f32 %v797_v43, %v764_v45  ;;  %v785_v4 = vmul.f32 %v1299_v24, %v767_v29  ;;  %v2303_v54 = vpop.permute.xlu2 %963  ;;  %v791_v53 = vadd.f32 %v786_v22, %v725_v1  ;;  %v2347_v45 = vld [vmem:[%s2445_s3 + $0x180] sm:$0xff]  ;;  %v2352_v43 = vld [vmem:[%s2445_s3 + $0x158] sm:$0xff] }
 0x1f0   :  { %1148 = vperm.xlu1 %1430, %v2111_v14   ;;  %1178 = vperm.xlu2 %1428, %v2506_v58   ;;  %v1436_v1 = vld [vmem:[%s2446_s4 + $0x1] ss:$0 sm:$0xff]  ;;  %v1341_v58 = vld [vmem:[%s2445_s3 + $0x188] sm:$0xff] }
 0x1f1   :  { %v413_v44 = vsel %vm69_vm0, %v402_v36, %v412_v12  ;;  %v790_v7 = vadd.f32 %v785_v4, %v724_v5  ;;  %v799_v14 = vrot.slane %v798_v17, 4 }
 0x1f2   :  { %v418_v10 = vadd.f32 %v1435_v6, %v413_v44  ;;  %v717_v31 = vpop.permute.xlu0 %716 }
 0x1f3   :  { %v805_v3 = vadd.f32 %v791_v53, %v790_v7  ;;  %v723_v35 = vmul.f32 %v2507_v26, %v717_v31  ;;  %v800_v60 = vadd.f32 %v799_v14, %v798_v17 }
 0x1f4   :  { %419 = vst [vmem:[%s2447_s5] sm:$0x3] %v418_v10  ;;  %v1336_v10 = vld [vmem:[%s2445_s3 + $0x160] sm:$0xff] }
 0x1f5   :  { %v806_v24 = vadd.f32 %v805_v3, %v792_v15  ;;  %v728_v2 = vadd.f32 %v723_v35, %v2508_v59  ;;  %v801_v51 = vrot.slane %v800_v60, 2  ;;  %v2514_v15 = vld [vmem:[#allocation22_spill] sm:$0xff]  ;;  %v1343_v59 = vld [vmem:[%s2445_s3 + $0x198] sm:$0xff] }
 0x1f6   :  { %v779_v0 = vpop.permute.xlu1 %778  ;;  %v1061_v3 = vmul.f32 %v1341_v58, %v2514_v15 }
 0x1f7   :  { %v788_v61 = vmul.f32 %v2269_v25, %v779_v0  ;;  %v2316_v46 = vpop.permute.xlu2 %983  ;;  %v794_v13 = vadd.f32 %v789_v34, %v728_v2  ;;  %v1333_v25 = vld [vmem:[%s2445_s3 + $0x148] sm:$0xff]  ;;  %v802_v55 = vadd.f32 %v801_v51, %v800_v60  ;;  %v1339_v0 = vld [vmem:[%s2445_s3 + $0x178] sm:$0xff] }
 0x1f8   :  { %1152 = vperm.xlu1 %1430, %v2144_v27   ;;  %1182 = vperm.xlu2 %1428, %v1754_v50   ;;  %v2331_v27 = vld [vmem:[%s2445_s3 + $0x140] sm:$0xff]  ;;  %v2336_v50 = vld [vmem:[%s2445_s3 + $0x168] sm:$0xff] }
 0x1f9   :  { %v793_v11 = vadd.f32 %v788_v61, %v2509_v63  ;;  %v966_v56 = vmul.f32 %v2331_v27, %v2511_v28  ;;  %v803_v39 = vrot.slane %v802_v55, 1  ;;  %v1348_v61 = vld [vmem:[%s2445_s3 + $0x1c0] sm:$0xff] }
 0x1fb   :  { %v807_v20 = vadd.f32 %v806_v24, %v793_v11  ;;  %v804_v22 = vadd.f32 %v803_v39, %v802_v55  ;;  %v1334_v24 = vld [vmem:[%s2445_s3 + $0x150] sm:$0xff] }
 0x1fc   :  { %v968_v34 = vmul.f32 %v1334_v24, %v2281_v8  ;;  %v1342_v8 = vld [vmem:[%s2445_s3 + $0x190] sm:$0xff] }
 0x1fd   :  { %v808_v40 = vadd.f32 %v807_v20, %v794_v13  ;;  %v2515_v20 = vld [vmem:[#allocation25_spill] sm:$0xff] }
 0x1fe   :  { %v1160_v18 = vmul.f32 %v1348_v61, %v2515_v20 }
 0x1ff   :  { %v809_v23 = vrot.slane %v808_v40, 4  ;;  %v949_v16 = vpop.permute.xlu1 %948 }
 0x200   :  { %v967_v48 = vmul.f32 %v1333_v25, %v949_v16  ;;  %1156 = vperm.xlu1 %1430, %v2146_v19   ;;  %v1009_v9 = vpop.permute.xlu2 %1008  ;;  %1186 = vperm.xlu2 %1428, %v2512_v37  }
 0x201   :  { %v810_v41 = vadd.f32 %v809_v23, %v808_v40  ;;  %v1027_v62 = vmul.f32 %v2336_v50, %v1009_v9  ;;  %v970_v23 = vmul.f32 %v1336_v10, %v2303_v54 }
 0x202   :  { %v1033_v38 = vadd.f32 %v1028_v52, %v967_v48 }
 0x203   :  { %v811_v30 = vrot.slane %v810_v41, 2  ;;  %v1032_v42 = vadd.f32 %v1027_v62, %v966_v56  ;;  %v1347_v56 = vld [vmem:[%s2445_s3 + $0x1b8] sm:$0xff] }
 0x205   :  { %v812_v33 = vadd.f32 %v811_v30, %v810_v41 }
 0x207   :  { %v813_v19 = vrot.slane %v812_v33, 1  ;;  %v959_v57 = vpop.permute.xlu1 %958 }
 0x208   :  { %v1021_v47 = vpop.permute.xlu2 %1020  ;;  %v969_v29 = vmul.f32 %v2352_v43, %v959_v57 }
 0x209   :  { %v814_v6 = vadd.f32 %v813_v19, %v812_v33  ;;  %v1030_v5 = vmul.f32 %v2347_v45, %v1021_v47  ;;  %v1083_v33 = vpop.permute.xlu0 %1082 }
 0x20b   :  { %v815_v36 = vsel %vm69_vm0, %v804_v22, %v814_v6  ;;  %v2360_v12 = vadd.f32 %v1030_v5, %v969_v29  ;;  %v998_v5 = vmul.f32 %v1334_v24, %v2316_v46  ;;  %v1344_v46 = vld [vmem:[%s2445_s3 + $0x1a0] sm:$0xff] }
 0x20c   :  { %v821_v17 = vadd.f32 %v1436_v1, %v815_v36 }
 0x20e   :  { %1305 = vst [vmem:[%s2447_s5 + $0x2] sm:$0x3] %v821_v17  ;;  %v2516_v17 = vld [vmem:[#allocation15_spill] sm:$0xff] }
 0x20f   :  { %v979_v4 = vpop.permute.xlu1 %978 }
 0x210   :  { %v997_v44 = vmul.f32 %v1333_v25, %v979_v4  ;;  %v1039_v53 = vpop.permute.xlu2 %1038 }
 0x211   :  { %v1113_v47 = vpop.permute.xlu0 %1112  ;;  %v1057_v29 = vmul.f32 %v2336_v50, %v1039_v53  ;;  %v1349_v50 = vld [vmem:[%s2445_s3 + $0x1c8] sm:$0xff] }
 0x212   :  { %v2366_v7 = vadd.f32 %v1058_v21, %v997_v44  ;;  %v2517_v21 = vld [vmem:[#allocation16_spill] sm:$0xff] }
 0x213   :  { %v999_v44 = vmul.f32 %v2352_v43, %v2517_v21  ;;  %v1350_v43 = vld [vmem:[%s2445_s3 + $0x1d0] sm:$0xff] }
 0x217   :  { %v994_v31 = vpop.permute.xlu1 %993 }
 0x218   :  { %v1000_v26 = vmul.f32 %v1336_v10, %v994_v31  ;;  %v1051_v35 = vpop.permute.xlu2 %1050  ;;  %v1345_v10 = vld [vmem:[%s2445_s3 + $0x1a8] sm:$0xff]  ;;  %v1125_v31 = vmul.f32 %v1344_v46, %v1113_v47 }
 0x219   :  { %v1060_v36 = vmul.f32 %v2347_v45, %v1051_v35 }
 0x21a   :  { %v2375_v14 = vadd.f32 %v1061_v3, %v1000_v26 }
 0x21b   :  { %v1065_v15 = vadd.f32 %v1060_v36, %v999_v44 }
 0x220   :  { %v1017_v2 = vpop.permute.xlu1 %1016 }
 0x221   :  { %v1029_v60 = vmul.f32 %v1339_v0, %v1017_v2  ;;  %v1079_v63 = vpop.permute.xlu2 %1078  ;;  %v1121_v2 = vpop.permute.xlu0 %1120 }
 0x222   :  { %v1094_v11 = vmul.f32 %v1343_v59, %v1079_v63 }
 0x223   :  { %v2390_v13 = vadd.f32 %v1029_v60, %v968_v34 }
 0x224   :  { %v1099_v51 = vadd.f32 %v1094_v11, %v1033_v38 }
 0x226   :  { %v1165_v40 = vadd.f32 %v1160_v18, %v1099_v51 }
 0x228   :  { %v1025_v25 = vpop.permute.xlu1 %1024 }
 0x229   :  { %v1031_v16 = vmul.f32 %v1341_v58, %v1025_v25  ;;  %v2394_v49 = vpop.permute.xlu2 %1090 }
 0x22b   :  { %v2396_v52 = vadd.f32 %v1031_v16, %v970_v23  ;;  %v1095_v23 = vmul.f32 %v1344_v46, %v1083_v33 }
 0x230   :  { %v1047_v48 = vpop.permute.xlu1 %1046 }
 0x231   :  { %v1109_v9 = vpop.permute.xlu2 %1108  ;;  %v1059_v6 = vmul.f32 %v1339_v0, %v1047_v48 }
 0x232   :  { %v1124_v4 = vmul.f32 %v1343_v59, %v1109_v9  ;;  %v1346_v59 = vld [vmem:[%s2445_s3 + $0x1b0] sm:$0xff] }
 0x233   :  { %v1064_v58 = vadd.f32 %v1059_v6, %v998_v5  ;;  %v1127_v51 = vmul.f32 %v1346_v59, %v1121_v2  ;;  %v1097_v33 = vmul.f32 %v1346_v59, %v2394_v49  ;;  %v1437_v49 = vld [vmem:[%s2446_s4 + $0x2] ss:$0 sm:$0xff] }
 0x234   :  { %v1129_v26 = vadd.f32 %v1124_v4, %v2366_v7 }
 0x235   :  { %v1130_v34 = vadd.f32 %v1125_v31, %v1064_v58  ;;  %v1132_v9 = vadd.f32 %v1127_v51, %v2375_v14 }
 0x239   :  { %v1075_v28 = vpop.permute.xlu1 %1074 }
 0x23a   :  { %v1093_v55 = vmul.f32 %v1342_v8, %v1075_v28  ;;  %v1141_v41 = vpop.permute.xlu2 %1140 }
 0x23b   :  { %v1159_v54 = vmul.f32 %v1347_v56, %v1141_v41 }
 0x23c   :  { %v1098_v37 = vadd.f32 %v1093_v55, %v1032_v42  ;;  %v996_v42 = vmul.f32 %v2331_v27, %v2516_v17  ;;  %v1100_v55 = vadd.f32 %v1095_v23, %v2390_v13 }
 0x23e   :  { %v1164_v62 = vadd.f32 %v1159_v54, %v1098_v37  ;;  %v1062_v45 = vadd.f32 %v1057_v29, %v996_v42  ;;  %v1102_v29 = vadd.f32 %v1097_v33, %v2396_v52 }
 0x240   :  { %v1199_v38 = vadd.f32 %v1165_v40, %v1164_v62 }
 0x241   :  { %v1087_v30 = vpop.permute.xlu1 %1086 }
 0x242   :  { %v1175_v39 = vpop.permute.xlu2 %1174  ;;  %v1096_v62 = vmul.f32 %v1345_v10, %v1087_v30 }
 0x243   :  { %v1190_v27 = vmul.f32 %v1348_v61, %v1175_v39  ;;  %v1351_v61 = vld [vmem:[%s2445_s3 + $0x1d8] sm:$0xff] }
 0x245   :  { %v1195_v63 = vadd.f32 %v1190_v27, %v1129_v26 }
 0x249   :  { %v1105_v19 = vpop.permute.xlu1 %1104 }
 0x24a   :  { %v1179_v57 = vpop.permute.xlu2 %1178  ;;  %v1123_v32 = vmul.f32 %v1342_v8, %v1105_v19 }
 0x24b   :  { %v1191_v24 = vmul.f32 %v1349_v50, %v1179_v57  ;;  %v1101_v57 = vadd.f32 %v1096_v62, %v2360_v12 }
 0x24c   :  { %v1128_v35 = vadd.f32 %v1123_v32, %v1062_v45 }
 0x24d   :  { %v1196_v7 = vadd.f32 %v1191_v24, %v1130_v34 }
 0x251   :  { %v1117_v1 = vpop.permute.xlu1 %1116 }
 0x252   :  { %v1183_v22 = vpop.permute.xlu2 %1182  ;;  %v1126_v53 = vmul.f32 %v1345_v10, %v1117_v1 }
 0x253   :  { %v1192_v20 = vmul.f32 %v1350_v43, %v1183_v22 }
 0x254   :  { %v1131_v11 = vadd.f32 %v1126_v53, %v1065_v15 }
 0x256   :  { %v1197_v16 = vadd.f32 %v1192_v20, %v1131_v11 }
 0x25a   :  { %v1171_v3 = vpop.permute.xlu1 %1170  ;;  %v1187_v60 = vpop.permute.xlu2 %1186 }
 0x25b   :  { %v1189_v0 = vmul.f32 %v1347_v56, %v1171_v3  ;;  %v1193_v25 = vmul.f32 %v1351_v61, %v1187_v60 }
 0x25d   :  { %v1194_v18 = vadd.f32 %v1189_v0, %v1128_v35  ;;  %v1198_v28 = vadd.f32 %v1193_v25, %v1132_v9 }
 0x25f   :  { %v1209_v40 = vadd.f32 %v1195_v63, %v1194_v18 }
 0x261   :  { %v1210_v48 = vadd.f32 %v1209_v40, %v1196_v7 }
 0x262   :  { %v1149_v8 = vpop.permute.xlu1 %1148 }
 0x263   :  { %v1211_v56 = vadd.f32 %v1210_v48, %v1197_v16  ;;  %v1161_v41 = vmul.f32 %v1349_v50, %v1149_v8 }
 0x265   :  { %v1212_v37 = vadd.f32 %v1211_v56, %v1198_v28  ;;  %v1166_v54 = vadd.f32 %v1161_v41, %v1100_v55 }
 0x267   :  { %v1200_v39 = vadd.f32 %v1199_v38, %v1166_v54  ;;  %v1213_v22 = vrot.slane %v1212_v37, 4 }
 0x269   :  { %v1214_v5 = vadd.f32 %v1213_v22, %v1212_v37 }
 0x26a   :  { %v1153_v19 = vpop.permute.xlu1 %1152 }
 0x26b   :  { %v1162_v1 = vmul.f32 %v1350_v43, %v1153_v19  ;;  %v1215_v17 = vrot.slane %v1214_v5, 2 }
 0x26d   :  { %v1167_v47 = vadd.f32 %v1162_v1, %v1101_v57  ;;  %v1216_v30 = vadd.f32 %v1215_v17, %v1214_v5 }
 0x26f   :  { %v1201_v6 = vadd.f32 %v1200_v39, %v1167_v47  ;;  %v1217_v21 = vrot.slane %v1216_v30, 1 }
 0x271   :  { %v1218_v58 = vadd.f32 %v1217_v21, %v1216_v30 }
 0x272   :  { %v1157_v14 = vpop.permute.xlu1 %1156 }
 0x273   :  { %v1163_v36 = vmul.f32 %v1351_v61, %v1157_v14 }
 0x275   :  { %v1168_v13 = vadd.f32 %v1163_v36, %v1102_v29 }
 0x277   :  { %v1202_v42 = vadd.f32 %v1201_v6, %v1168_v13 }
 0x279   :  { %v1203_v4 = vrot.slane %v1202_v42, 4 }
 0x27b   :  { %v1204_v38 = vadd.f32 %v1203_v4, %v1202_v42 }
 0x27d   :  { %v1205_v32 = vrot.slane %v1204_v38, 2 }
 0x27f   :  { %v1206_v12 = vadd.f32 %v1205_v32, %v1204_v38 }
 0x281   :  { %v1207_v44 = vrot.slane %v1206_v12, 1 }
 0x283   :  { %v1208_v10 = vadd.f32 %v1207_v44, %v1206_v12 }
 0x285   :  { %v1219_v52 = vsel %vm69_vm0, %v1208_v10, %v1218_v58 }
 0x286   :  { %v1225_v50 = vadd.f32 %v1437_v49, %v1219_v52 }
 0x288   :  { %1353 = vst [vmem:[%s2447_s5 + $0x4] sm:$0x3] %v1225_v50 }

</bundles_post_ra>
